<compile_context>
chip_gen: v5e
topology: v5e:2x2
jax: 0.10.0
libtpu: 0.0.40
codegen_flags: <defaults>
</compile_context>

<pallas_src>
import functools

import jax
import jax.numpy as jnp
from jax.experimental import pallas as pl
from jax.experimental.pallas import tpu as pltpu

STD = 10.0  # matches register_buffer('std', 10.0)


def fulldpm_kernel(base_ref, eps_ref, wl_ref, scal_ref,
                   w1_ref, b1_ref, w2_ref, b2_ref,
                   out_ref, *, d_noise):
    f32 = jnp.float32
    bf16 = jnp.bfloat16
    d = base_ref.shape[1]

    @pl.when(pl.program_id(0) == 0)
    def _():
        out_ref[...] = jnp.zeros_like(out_ref)

    base = base_ref[...].astype(f32)
    epsc = eps_ref[...].astype(f32)
    c1 = scal_ref[:, 0:1]        # mgen*sqrt(ab) + (1-mgen)
    c2 = scal_ref[:, 1:2]        # mgen*sqrt(1-ab)

    # trans_x / trans_h .add_noise on the h/x lanes only; pe/beta/pad lanes
    # pass through untouched (eps is zero there anyway).
    lane = jax.lax.broadcasted_iota(jnp.int32, (1, d), 1)
    blended = c1 * base + c2 * epsc
    act = jnp.where(lane < d_noise, blended, base).astype(bf16)   # [T, D] bf16

    # eps_net surrogate: fused first-layer matmul over the packed frame.
    hid = jnp.dot(act, w1_ref[...], preferred_element_type=f32) + b1_ref[...]
    hid = jnp.maximum(hid, 0.0).astype(bf16)                      # [T, hidden]

    # fused second layer: columns 0..latent-1 -> eps_H_pred,
    # latent..latent+x_dim-1 -> eps_X_pred, rest zero.
    pred = jnp.dot(hid, w2_ref[...], preferred_element_type=f32) + b2_ref[...]

    # masked MSE partial numerators, accumulated across the grid into one
    # lane-dense [1, D] f32 row (H lanes and X lanes split in the epilogue).
    diff = pred - epsc
    out_ref[...] += jnp.sum(wl_ref[...].astype(f32) * (diff * diff),
                            axis=0, keepdims=True)


def init_params(key, latent, n_atoms, pe_dim, hidden):
    x_dim = n_atoms * 3
    ks = jax.random.split(key, 6)
    d_in = latent + x_dim + pe_dim + 1
    s1 = 1.0 / jnp.sqrt(jnp.float32(d_in))
    s2 = 1.0 / jnp.sqrt(jnp.float32(hidden))
    return dict(
        w1h=jax.random.normal(ks[0], (latent, hidden), jnp.float32) * s1,
        w1x=jax.random.normal(ks[1], (x_dim, hidden), jnp.float32) * s1,
        w1p=jax.random.normal(ks[2], (pe_dim, hidden), jnp.float32) * s1,
        w1b=jax.random.normal(ks[3], (1, hidden), jnp.float32) * s1,
        b1=jnp.zeros((1, hidden), jnp.float32),
        w2h=jax.random.normal(ks[4], (hidden, latent), jnp.float32) * s2,
        w2x=jax.random.normal(ks[5], (hidden, x_dim), jnp.float32) * s2,
        b2h=jnp.zeros((1, latent), jnp.float32),
        b2x=jnp.zeros((1, x_dim), jnp.float32),
    )


@functools.partial(jax.jit, static_argnames=("num_steps", "tile_n"))
def fulldpm_forward(H0, X0, position_embedding, mask_generate, lengths,
                    atom_mask, params, noise_key, t_key,
                    num_steps=100, tile_n=2048):
    N, latent = H0.shape
    n_atoms = X0.shape[1]
    pe_dim = position_embedding.shape[1]
    x_dim = n_atoms * 3
    hidden = params["w1h"].shape[1]
    B = lengths.shape[0]
    bf = jnp.bfloat16
    f32 = jnp.float32

    d_noise = latent + x_dim                       # lanes that receive noise
    d_used = d_noise + pe_dim + 1                  # + pos_emb + beta
    D = ((d_used + 127) // 128) * 128              # lane-dense packed width

    # --- _get_batch_ids ---
    marks = jnp.zeros((N,), jnp.int32).at[jnp.cumsum(lengths)[:-1]].set(1)
    batch_ids = jnp.cumsum(marks)

    # --- t ~ Uniform{0..num_steps} per batch element (torch.randint semantics) ---
    t = jax.random.randint(t_key, (B,), 0, num_steps + 1)

    # --- centers via scatter_mean over CA atoms of context residues ---
    ctx_mask = (~mask_generate)[:, None] & atom_mask            # [N, 14]
    w = ctx_mask[:, 1].astype(f32)                              # only CA (atom 1)
    sums = jax.ops.segment_sum(X0[:, 1, :] * w[:, None], batch_ids, num_segments=B)
    counts = jax.ops.segment_sum(w, batch_ids, num_segments=B)
    centers_b = sums / jnp.maximum(counts, 1e-8)[:, None]       # [B, 3]

    # --- _normalize_position (L is None branch), folded into the wrapper ---
    X_norm = (X0 - centers_b[batch_ids][:, None, :]) / STD      # [N, 14, 3]
    X_norm = X_norm.reshape(N, x_dim)                           # atom-major flat

    # --- DDPM linear-beta schedule (construct_transition surrogate) ---
    # TODO(synk): construct_transition is not defined in the module; linear-beta DDPM used.
    betas = jnp.linspace(1e-4, 0.02, num_steps + 1, dtype=f32)
    alpha_bar = jnp.cumprod(1.0 - betas)
    sab = jnp.sqrt(alpha_bar)[t][batch_ids]                     # [N]
    s1ab = jnp.sqrt(1.0 - alpha_bar)[t][batch_ids]              # [N]
    beta_feat = betas[t][batch_ids]                             # [N]
    mgen_f = mask_generate.astype(f32)                          # [N]

    # masked-noise blend coefficients, precomputed once
    c1 = mgen_f * sab + (1.0 - mgen_f)
    c2 = mgen_f * s1ab
    scal = jnp.stack([c1, c2], axis=1)                          # [N, 2] f32

    # --- noise ---
    kx, kh = jax.random.split(noise_key)
    epsX = jax.random.normal(kx, (N, x_dim), f32)
    epsH = jax.random.normal(kh, (N, latent), f32)

    # --- lane-dense packed frames ---
    zpad = lambda width: jnp.zeros((N, width), f32)
    base = jnp.concatenate(
        [H0, X_norm, position_embedding, beta_feat[:, None], zpad(D - d_used)],
        axis=1).astype(bf)                                       # [N, D]
    eps_cat = jnp.concatenate([epsH, epsX, zpad(D - d_noise)], axis=1).astype(bf)

    mask_loss = mask_generate[:, None] & atom_mask               # [N, 14]
    mloss_f = mask_loss.astype(f32)
    wloss = jnp.concatenate(
        [jnp.broadcast_to(mgen_f[:, None], (N, latent)),         # H lanes
         jnp.repeat(mloss_f, 3, axis=1),                         # X lanes (per-coord)
         zpad(D - d_noise)], axis=1).astype(bf)                  # [N, D]

    # --- pad N to a multiple of tile_n (wloss is zero in padding -> no loss) ---
    n_pad = ((N + tile_n - 1) // tile_n) * tile_n
    pad2 = lambda a: jnp.pad(a, ((0, n_pad - N), (0, 0)))
    base_p, eps_p, wl_p, scal_p = pad2(base), pad2(eps_cat), pad2(wloss), pad2(scal)

    # --- resident weights: stacked/padded to the packed frame ---
    W1 = jnp.concatenate(
        [params["w1h"], params["w1x"], params["w1p"], params["w1b"],
         jnp.zeros((D - d_used, hidden), f32)], axis=0).astype(bf)     # [D, hidden]
    b1 = params["b1"]                                                   # [1, hidden]
    W2 = jnp.concatenate(
        [params["w2h"], params["w2x"],
         jnp.zeros((hidden, D - d_noise), f32)], axis=1).astype(bf)     # [hidden, D]
    b2 = jnp.concatenate(
        [params["b2h"], params["b2x"], jnp.zeros((1, D - d_noise), f32)], axis=1)

    num_tiles = n_pad // tile_n

    def node(feat):          # streamed per-node frames, tiled over N
        return pl.BlockSpec((tile_n, feat), lambda i: (i, 0))

    def resident(shape):     # weights / biases, resident across the grid
        return pl.BlockSpec(shape, lambda i: (0, 0))

    in_specs = [
        node(D), node(D), node(D), node(2),
        resident((D, hidden)), resident((1, hidden)),
        resident((hidden, D)), resident((1, D)),
    ]
    # single lane-dense accumulator row (full-extent block, unmasked lanes)
    out_specs = pl.BlockSpec((1, D), lambda i: (0, 0))
    out_shape = jax.ShapeDtypeStruct((1, D), f32)

    out = pl.pallas_call(
        functools.partial(fulldpm_kernel, d_noise=d_noise),
        grid=(num_tiles,),
        in_specs=in_specs,
        out_specs=out_specs,
        out_shape=out_shape,
        compiler_params=pltpu.CompilerParams(
            dimension_semantics=("arbitrary",),          # reduction into resident out
            vmem_limit_bytes=56 * 1024 * 1024),          # headroom on v7x's 64 MiB
    )(base_p, eps_p, wl_p, scal_p, W1, b1, W2, b2)

    # split the packed numerator row into H / X pieces; PyTorch reference:
    #   loss_X numerator sums over all 3 coords of each masked atom,
    #   denominator = #masked atoms; loss_H denominator = #generated nodes.
    row = out[0]
    num_h = jnp.sum(row[:latent])
    num_x = jnp.sum(row[latent:latent + x_dim])
    den_x = mask_loss.sum().astype(f32) + 1e-8
    den_h = mask_generate.sum().astype(f32) + 1e-8
    return {"X": num_x / den_x, "H": num_h / den_h}


if __name__ == "__main__":
    key = jax.random.PRNGKey(0)
    k_data, k_param, k_noise, k_t, k_mask = jax.random.split(key, 5)

    # 2 chains (lengths 150 + 250) -> N=400 residues, 14 atoms each.
    # TILE_N=256 -> N padded to 512, grid of 2 tiles (exercises tiling,
    # padding and the cross-tile accumulator). Real workloads: tile_n>=2048.
    n_atoms = 14
    latent, pe_dim, hidden = 32, 32, 128
    num_steps = 100
    lengths = jnp.array([150, 250], dtype=jnp.int32)
    N = 400
    TILE_N = 256

    kd = jax.random.split(k_data, 3)
    H0 = jax.random.normal(kd[0], (N, latent), jnp.float32)
    X0 = jax.random.normal(kd[1], (N, n_atoms, 3), jnp.float32) * 3.0
    position_embedding = jax.random.normal(kd[2], (N, pe_dim), jnp.float32)

    # mask_generate: last residues of each chain are generated (peptide)
    mask_generate = jnp.zeros((N,), dtype=bool)
    mask_generate = mask_generate.at[130:150].set(True).at[380:400].set(True)
    # atom_mask: random presence, but backbone atoms (0..3) always present
    atom_mask = jax.random.bernoulli(k_mask, 0.8, (N, n_atoms))
    atom_mask = atom_mask.at[:, :4].set(True)

    params = init_params(k_param, latent, n_atoms, pe_dim, hidden)

    loss_dict = fulldpm_forward(H0, X0, position_embedding, mask_generate,
                                lengths, atom_mask, params, k_noise, k_t,
                                num_steps=num_steps, tile_n=TILE_N)
    jax.block_until_ready(loss_dict)
    assert jnp.isfinite(loss_dict["X"]) and jnp.isfinite(loss_dict["H"])
    print("KERNEL_OK")
</pallas_src>

<mosaic_0001>
module attributes {stable_mosaic.version = 11 : i64} {
  func.func @fulldpm_kernel(%arg0: i32, %arg1: memref<256x128xbf16, #tpu.memory_space<vmem>>, %arg2: memref<256x128xbf16, #tpu.memory_space<vmem>>, %arg3: memref<256x128xbf16, #tpu.memory_space<vmem>>, %arg4: memref<256x2xf32, #tpu.memory_space<vmem>>, %arg5: memref<128x128xbf16, #tpu.memory_space<vmem>>, %arg6: memref<1x128xf32, #tpu.memory_space<vmem>>, %arg7: memref<128x128xbf16, #tpu.memory_space<vmem>>, %arg8: memref<1x128xf32, #tpu.memory_space<vmem>>, %arg9: memref<1x128xf32, #tpu.memory_space<vmem>>) attributes {dimension_semantics = [#tpu.dimension_semantics<arbitrary>], iteration_bounds = array<i64: 2>, scalar_prefetch = 0 : i64, scratch_operands = 0 : i64, tpu.core_type = #tpu.core_type<tc>, window_params = [{transform_indices = @transform_0, window_bounds = array<i64: 256, 128>}, {transform_indices = @transform_1, window_bounds = array<i64: 256, 128>}, {transform_indices = @transform_2, window_bounds = array<i64: 256, 128>}, {transform_indices = @transform_3, window_bounds = array<i64: 256, 2>}, {pipeline_mode = #tpu.pipeline_mode<synchronous>, transform_indices = @transform_4, window_bounds = array<i64: 128, 128>}, {pipeline_mode = #tpu.pipeline_mode<synchronous>, transform_indices = @transform_5, window_bounds = array<i64: 1, 128>}, {pipeline_mode = #tpu.pipeline_mode<synchronous>, transform_indices = @transform_6, window_bounds = array<i64: 128, 128>}, {pipeline_mode = #tpu.pipeline_mode<synchronous>, transform_indices = @transform_7, window_bounds = array<i64: 1, 128>}, {pipeline_mode = #tpu.pipeline_mode<synchronous>, transform_indices = @transform_8, window_bounds = array<i64: 1, 128>}]} {
    %c0_i32 = arith.constant 0 : i32
    %0 = arith.cmpi eq, %arg0, %c0_i32 : i32
    %1 = arith.extui %0 : i1 to i32
    %c0_i32_0 = arith.constant 0 : i32
    %2 = arith.cmpi ne, %1, %c0_i32_0 : i32
    scf.if %2 {
      %cst_24 = arith.constant 0.000000e+00 : f32
      %44 = vector.broadcast %cst_24 : f32 to vector<1x128xf32>
      %c0_25 = arith.constant 0 : index
      %c0_26 = arith.constant 0 : index
      %45 = vector.load %arg9[%c0_25, %c0_26] : memref<1x128xf32, #tpu.memory_space<vmem>>, vector<1x128xf32>
      tpu.vector_store %arg9[%c0_25, %c0_26], %44 {strides = array<i32>} : memref<1x128xf32, #tpu.memory_space<vmem>>, vector<1x128xf32>,
    } else {
    }
    %c0 = arith.constant 0 : index
    %c0_1 = arith.constant 0 : index
    %3 = vector.load %arg1[%c0, %c0_1] : memref<256x128xbf16, #tpu.memory_space<vmem>>, vector<256x128xbf16>
    %4 = arith.extf %3 : vector<256x128xbf16> to vector<256x128xf32>
    %c0_2 = arith.constant 0 : index
    %c0_3 = arith.constant 0 : index
    %5 = vector.load %arg2[%c0_2, %c0_3] : memref<256x128xbf16, #tpu.memory_space<vmem>>, vector<256x128xbf16>
    %6 = arith.extf %5 : vector<256x128xbf16> to vector<256x128xf32>
    %c0_4 = arith.constant 0 : index
    %c0_5 = arith.constant 0 : index
    %7 = vector.load %arg4[%c0_4, %c0_5] : memref<256x2xf32, #tpu.memory_space<vmem>>, vector<256x1xf32>
    %c0_6 = arith.constant 0 : index
    %c1 = arith.constant 1 : index
    %8 = vector.load %arg4[%c0_6, %c1] : memref<256x2xf32, #tpu.memory_space<vmem>>, vector<256x1xf32>
    %9 = tpu.iota {dimensions = array<i32: 1>} : vector<1x128xi32>
    %10 = vector.broadcast %7 : vector<256x1xf32> to vector<256x128xf32>
    %11 = arith.mulf %10, %4 : vector<256x128xf32>
    %12 = vector.broadcast %8 : vector<256x1xf32> to vector<256x128xf32>
    %13 = arith.mulf %12, %6 : vector<256x128xf32>
    %14 = arith.addf %11, %13 : vector<256x128xf32>
    %c74_i32 = arith.constant 74 : i32
    %15 = vector.broadcast %c74_i32 : i32 to vector<1x128xi32>
    %16 = arith.cmpi slt, %9, %15 : vector<1x128xi32>
    %17 = vector.shape_cast %16 : vector<1x128xi1> to vector<1x128xi1>
    %18 = vector.broadcast %17 : vector<1x128xi1> to vector<256x128xi1>
    %19 = arith.select %18, %14, %4 : vector<256x128xi1>, vector<256x128xf32>
    %20 = arith.truncf %19 : vector<256x128xf32> to vector<256x128xbf16>
    %c0_7 = arith.constant 0 : index
    %c0_8 = arith.constant 0 : index
    %21 = vector.load %arg5[%c0_7, %c0_8] : memref<128x128xbf16, #tpu.memory_space<vmem>>, vector<128x128xbf16>
    %cst = arith.constant dense<0.000000e+00> : vector<256x128xf32>
    %22 = tpu.matmul %20, %21, %cst {dimension_numbers = #tpu.dot_dimension_numbers<[1], [0], [0], [1], [0, 0, 1, 1], [], []>} : vector<256x128xbf16>, vector<128x128xbf16>, vector<256x128xf32> -> vector<256x128xf32>
    %c0_9 = arith.constant 0 : index
    %c0_10 = arith.constant 0 : index
    %23 = vector.load %arg6[%c0_9, %c0_10] : memref<1x128xf32, #tpu.memory_space<vmem>>, vector<1x128xf32>
    %24 = vector.broadcast %23 : vector<1x128xf32> to vector<256x128xf32>
    %25 = arith.addf %22, %24 : vector<256x128xf32>
    %cst_11 = arith.constant 0.000000e+00 : f32
    %26 = vector.broadcast %cst_11 : f32 to vector<256x128xf32>
    %27 = arith.maximumf %25, %26 : vector<256x128xf32>
    %28 = arith.truncf %27 : vector<256x128xf32> to vector<256x128xbf16>
    %c0_12 = arith.constant 0 : index
    %c0_13 = arith.constant 0 : index
    %29 = vector.load %arg7[%c0_12, %c0_13] : memref<128x128xbf16, #tpu.memory_space<vmem>>, vector<128x128xbf16>
    %cst_14 = arith.constant dense<0.000000e+00> : vector<256x128xf32>
    %30 = tpu.matmul %28, %29, %cst_14 {dimension_numbers = #tpu.dot_dimension_numbers<[1], [0], [0], [1], [0, 0, 1, 1], [], []>} : vector<256x128xbf16>, vector<128x128xbf16>, vector<256x128xf32> -> vector<256x128xf32>
    %c0_15 = arith.constant 0 : index
    %c0_16 = arith.constant 0 : index
    %31 = vector.load %arg8[%c0_15, %c0_16] : memref<1x128xf32, #tpu.memory_space<vmem>>, vector<1x128xf32>
    %32 = vector.broadcast %31 : vector<1x128xf32> to vector<256x128xf32>
    %33 = arith.addf %30, %32 : vector<256x128xf32>
    %34 = arith.subf %33, %6 : vector<256x128xf32>
    %c0_17 = arith.constant 0 : index
    %c0_18 = arith.constant 0 : index
    %35 = vector.load %arg9[%c0_17, %c0_18] : memref<1x128xf32, #tpu.memory_space<vmem>>, vector<1x128xf32>
    %c0_19 = arith.constant 0 : index
    %c0_20 = arith.constant 0 : index
    %36 = vector.load %arg3[%c0_19, %c0_20] : memref<256x128xbf16, #tpu.memory_space<vmem>>, vector<256x128xbf16>
    %37 = arith.extf %36 : vector<256x128xbf16> to vector<256x128xf32>
    %38 = arith.mulf %34, %34 : vector<256x128xf32>
    %39 = arith.mulf %37, %38 : vector<256x128xf32>
    %cst_21 = arith.constant dense<0.000000e+00> : vector<128xf32>
    %40 = vector.multi_reduction <add>, %39, %cst_21 [0] : vector<256x128xf32> to vector<128xf32>
    %41 = vector.shape_cast %40 : vector<128xf32> to vector<1x128xf32>
    %42 = arith.addf %35, %41 : vector<1x128xf32>
    %c0_22 = arith.constant 0 : index
    %c0_23 = arith.constant 0 : index
    %43 = vector.load %arg9[%c0_22, %c0_23] : memref<1x128xf32, #tpu.memory_space<vmem>>, vector<1x128xf32>
    tpu.vector_store %arg9[%c0_22, %c0_23], %42 {strides = array<i32>} : memref<1x128xf32, #tpu.memory_space<vmem>>, vector<1x128xf32>,
    return
  }
  func.func @transform_0(%arg0: i32) -> (i32, i32) {
    %c0_i32 = arith.constant 0 : i32
    %c0_i32_0 = arith.constant 0 : i32
    return %arg0, %c0_i32 : i32, i32
  }
  func.func @transform_1(%arg0: i32) -> (i32, i32) {
    %c0_i32 = arith.constant 0 : i32
    %c0_i32_0 = arith.constant 0 : i32
    return %arg0, %c0_i32 : i32, i32
  }
  func.func @transform_2(%arg0: i32) -> (i32, i32) {
    %c0_i32 = arith.constant 0 : i32
    %c0_i32_0 = arith.constant 0 : i32
    return %arg0, %c0_i32 : i32, i32
  }
  func.func @transform_3(%arg0: i32) -> (i32, i32) {
    %c0_i32 = arith.constant 0 : i32
    %c0_i32_0 = arith.constant 0 : i32
    return %arg0, %c0_i32 : i32, i32
  }
  func.func @transform_4(%arg0: i32) -> (i32, i32) {
    %c0_i32 = arith.constant 0 : i32
    %c0_i32_0 = arith.constant 0 : i32
    %c0_i32_1 = arith.constant 0 : i32
    return %c0_i32, %c0_i32_0 : i32, i32
  }
  func.func @transform_5(%arg0: i32) -> (i32, i32) {
    %c0_i32 = arith.constant 0 : i32
    %c0_i32_0 = arith.constant 0 : i32
    %c0_i32_1 = arith.constant 0 : i32
    return %c0_i32, %c0_i32_0 : i32, i32
  }
  func.func @transform_6(%arg0: i32) -> (i32, i32) {
    %c0_i32 = arith.constant 0 : i32
    %c0_i32_0 = arith.constant 0 : i32
    %c0_i32_1 = arith.constant 0 : i32
    return %c0_i32, %c0_i32_0 : i32, i32
  }
  func.func @transform_7(%arg0: i32) -> (i32, i32) {
    %c0_i32 = arith.constant 0 : i32
    %c0_i32_0 = arith.constant 0 : i32
    %c0_i32_1 = arith.constant 0 : i32
    return %c0_i32, %c0_i32_0 : i32, i32
  }
  func.func @transform_8(%arg0: i32) -> (i32, i32) {
    %c0_i32 = arith.constant 0 : i32
    %c0_i32_0 = arith.constant 0 : i32
    %c0_i32_1 = arith.constant 0 : i32
    return %c0_i32, %c0_i32_0 : i32, i32
  }
}

</mosaic_0001>

<bundles_post_ra>
// kernel: fulldpm_forward.1
= control target key start
LH: loop header
LB: loop body
LE: loop exit
PB: predicated region body
PF: predicated region fallthrough
CT: control target
= control target key end

     0   :  { %s2038_s27 = smov 0   ;;  %s2664_s0 = inlined_call_operand.vmem [shape: bf16[512,128], index: 0, kind: input, shape index: {}]   ;;  %s2665_s1 = inlined_call_operand.vmem [shape: bf16[512,128], index: 1, kind: input, shape index: {}]   ;;  %s2666_s2 = inlined_call_operand.vmem [shape: bf16[512,128], index: 2, kind: input, shape index: {}]   ;;  %s2667_s3 = inlined_call_operand.vmem [shape: f32[512,2], index: 3, kind: input, shape index: {}]   ;;  %s2668_s4 = inlined_call_operand.vmem [shape: bf16[128,128], index: 4, kind: input, shape index: {}]   ;;  %s2669_s5 = inlined_call_operand.vmem [shape: f32[1,128], index: 5, kind: input, shape index: {}]   ;;  %s2670_s6 = inlined_call_operand.vmem [shape: bf16[128,128], index: 6, kind: input, shape index: {}]   ;;  %s2671_s7 = inlined_call_operand.vmem [shape: f32[1,128], index: 7, kind: input, shape index: {}]   ;;  %s2672_s8 = inlined_call_operand.vmem [shape: f32[1,128], index: 8, kind: output, shape index: {}]  }
   0x1 LB: > { %s1587_s28 = sadd.s32 4294967295, %s1988_s27   ;;  %p1590_p0 = scmp.ge.s32.totalorder %s1988_s27, 1  ;;  %s1988_s27 = sphi %s2038_s27, %s18_s27  }
   0x2   : > { %p291_p1 = scmp.lt.s32.totalorder %s1988_s27, 3 }
   0x4   : > { %p292_p2 = pnand %p1590_p0, %p291_p1 }
   0x5   : > { %s1591_s29 = sshll.u32 (!%p292_p2), %s1587_s28, 5  ;;  %p1599_p4 = scmp.ne.s32.totalorder (!%p292_p2), %s1587_s28, 0 }
   0x6   : > { %295 = sbr.rel (%p292_p2) target bundleno = 653 (0x28d), region = 52  ;;  %p336_p3 = scmp.lt.s32.totalorder (!%p292_p2), %s1591_s29, 63 }
   0xb   : > { %s2690_s29 = smov (!%p336_p3, %s1591_s29), 63  ;;  %362 = sbr.rel (%p1599_p4) target bundleno = 18 (0x12), region = 56 }
   0xc   : > { %s1592_s30 = sshll.u32 %s2690_s29, 2  ;;  %s1598_s9 = sshll.u32 %s2690_s29, 3 }
   0xd   : > { %s2049_s12 = scalar_lea.vmem %s2664_s0, %s1592_s30  ;;  %s2054_s15 = scalar_lea.vmem %s2665_s1, %s1592_s30 }
   0xe   : > { %s2059_s18 = scalar_lea.vmem %s2666_s2, %s1592_s30  ;;  %s2064_s21 = scalar_lea.vmem %s2667_s3, %s1598_s9 }
  0x10   : > { %v1990_v0 = vmov 0.0  }
  0x11   : > { %363 = vst [vmem:[%s2672_s8] sm:$0x1] %v1990_v0 }
  0x12 PF: > { %v494_v1 = vld [vmem:[%s2064_s21 + $0x10] sm:$0xff]  ;;  %v492_v2 = vld [vmem:[%s2064_s21] sm:$0xff]  ;;  %v1991_v3 = vmov 1   ;;  %v1992_v4 = vmov 0   ;;  %v495_v5 = vld [vmem:[%s2064_s21 + $0x18] sm:$0xff]  ;;  %v524_v43 = vlaneseq }
  0x13   : > { %1947 = vset.pattern.permute.xlu1 %v1991_v3  ;;  %1948 = vset.pattern.permute.xlu2 %v1992_v4  ;;  %v493_v6 = vld [vmem:[%s2064_s21 + $0x8] sm:$0xff]  ;;  %v508_v7 = vld [vmem:[%s2064_s21 + $0x80] sm:$0xff]  ;;  %v511_v8 = vld [vmem:[%s2064_s21 + $0x98] sm:$0xff] }
  0x14   : > { %1946 = vset.pattern.permute.xlu0 %v1992_v4  ;;  %538 = vperm.xlu2 %1948, %v494_v1   ;;  %v2079_v9 = vld [vmem:[%s2064_s21 + $0xb8] sm:$0xff]  ;;  %v509_v10 = vld [vmem:[%s2064_s21 + $0x88] sm:$0xff]  ;;  %v496_v11 = vld [vmem:[%s2064_s21 + $0x20] sm:$0xff]  ;;  %v2167_v50 = vand.u32 127, %v524_v43 }
  0x15   : > { %719 = vperm.xlu1 %1947, %v492_v2   ;;  %528 = vperm.xlu0 %1946, %v492_v2   ;;  %v497_v12 = vld [vmem:[%s2064_s21 + $0x28] sm:$0xff]  ;;  %v510_v13 = vld [vmem:[%s2064_s21 + $0x90] sm:$0xff]  ;;  %v499_v15 = vld [vmem:[%s2064_s21 + $0x38] sm:$0xff] }
  0x16   : > { %v498_v14 = vld [vmem:[%s2064_s21 + $0x30] sm:$0xff]  ;;  %v513_v16 = vld [vmem:[%s2064_s21 + $0xa8] sm:$0xff]  ;;  %v512_v17 = vld [vmem:[%s2064_s21 + $0xa0] sm:$0xff]  ;;  %vm910_vm0 = vcmp.lt.s32.totalorder %v2167_v50, 74 }
  0x17   : > { %v1673_v18 = vld [vmem:[%s2668_s4 + $0x38] sm:$0xff]  ;;  %v1672_v19 = vld [vmem:[%s2668_s4 + $0x30] sm:$0xff]  ;;  %v500_v20 = vld [vmem:[%s2064_s21 + $0x40] sm:$0xff] }
  0x18   : > { %1029 = vmatpush.bf16.msra.mxu0 %v1673_v18  ;;  %1919 = vmatpush.bf16.msra.mxu2 %v1673_v18  ;;  %v1671_v21 = vld [vmem:[%s2668_s4 + $0x28] sm:$0xff]  ;;  %v1670_v22 = vld [vmem:[%s2668_s4 + $0x20] sm:$0xff]  ;;  %v502_v23 = vld [vmem:[%s2064_s21 + $0x50] sm:$0xff] }
  0x19   : > { %v501_v24 = vld [vmem:[%s2064_s21 + $0x48] sm:$0xff]  ;;  %v1669_v25 = vld [vmem:[%s2668_s4 + $0x18] sm:$0xff]  ;;  %v1668_v27 = vld [vmem:[%s2668_s4 + $0x10] sm:$0xff] }
  0x1a   : > { %v2121_v26 = vld [vmem:[%s2064_s21 + $0xc8] sm:$0xff]  ;;  %v514_v29 = vld [vmem:[%s2064_s21 + $0xb0] sm:$0xff]  ;;  %v2135_v31 = vld [vmem:[%s2064_s21 + $0x60] sm:$0xff] }
  0x1b   : > { %v1667_v30 = vld [vmem:[%s2668_s4 + $0x8] sm:$0xff]  ;;  %v1666_v32 = vld [vmem:[%s2668_s4] sm:$0xff]  ;;  %v503_v35 = vld [vmem:[%s2064_s21 + $0x58] sm:$0xff] }
  0x1c   : > { %543 = vperm.xlu2 %1948, %v495_v5   ;;  %1030 = vmatpush.bf16.msra.mxu0 %v1672_v19  ;;  %v2152_v36 = vld [vmem:[%s2054_s15] sm:$0xff]   ;;  %v2160_v45 = vld [vmem:[%s2064_s21 + $0xd8] sm:$0xff]  ;;  %v2176_v58 = vld [vmem:[%s2064_s21 + $0x70] sm:$0xff] }
  0x1d   : > { %723 = vperm.xlu1 %1947, %v493_v6   ;;  %533 = vperm.xlu0 %1946, %v493_v6   ;;  %v1683_v37 = vld [vmem:[%s2049_s12] sm:$0xff]   ;;  %v1748_v40 = vunpack.c.l.bf16 %v2152_v36  ;;  %v1749_v48 = vunpack.c.h.bf16 %v2152_v36  ;;  %v505_v2 = vld [vmem:[%s2064_s21 + $0x68] sm:$0xff] }
  0x1e   : > { %1920 = vmatpush.bf16.msra.mxu2 %v1672_v19  ;;  %v1684_v41 = vunpack.c.l.bf16 %v1683_v37  ;;  %v516_v44 = vld [vmem:[%s2064_s21 + $0xc0] sm:$0xff]  ;;  %v1685_v49 = vunpack.c.h.bf16 %v1683_v37  ;;  %v1904_v36 = vld [vmem:[%s2059_s18 + $0x8] sm:$0xff]  }
  0x1f   : > { %v2216_v18 = vld [vmem:[%s2054_s15 + $0x40] sm:$0xff]  }
  0x20   : > { %1031 = vmatpush.bf16.msra.mxu0 %v1671_v21 }
  0x22   : > { %1921 = vmatpush.bf16.msra.mxu2 %v1671_v21 }
  0x24   : > { %608 = vperm.xlu2 %1948, %v508_v7   ;;  %1032 = vmatpush.bf16.msra.mxu0 %v1670_v22 }
  0x25   : > { %731 = vperm.xlu1 %1947, %v495_v5   ;;  %623 = vperm.xlu0 %1946, %v511_v8   ;;  %v2197_v5 = vld [vmem:[%s2054_s15 + $0x8] sm:$0xff]  }
  0x26   : > { %1922 = vmatpush.bf16.msra.mxu2 %v1670_v22 }
  0x28   : > { %1033 = vmatpush.bf16.msra.mxu0 %v1669_v25 }
  0x2a   : > { %1923 = vmatpush.bf16.msra.mxu2 %v1669_v25 }
  0x2c   : > { %1950 = vset.pattern.permute.xlu2 %v1991_v3  ;;  %1034 = vmatpush.bf16.msra.mxu0 %v1668_v27 }
  0x2d   : > { %1949 = vset.pattern.permute.xlu1 %v1992_v4  ;;  %643 = vperm.xlu0 %1946, %v2079_v9  }
  0x2e   : > { %783 = vperm.xlu2 %1950, %v508_v7   ;;  %613 = vperm.xlu1 %1949, %v509_v10  }
  0x2f   : > { %1924 = vmatpush.bf16.msra.mxu2 %v1668_v27 }
  0x30   : > { %1035 = vmatpush.bf16.msra.mxu0 %v1667_v30 }
  0x33   : > { %1925 = vmatpush.bf16.msra.mxu2 %v1667_v30 }
  0x34   : > { %1036 = vmatpush.bf16.msra.mxu0 %v1666_v32 }
  0x35   : > { %1961 = vset.pattern.permute.xlu0 %v1991_v3 }
  0x36   : > { %1951 = vset.pattern.permute.xlu2 %v1992_v4  ;;  %548 = vperm.xlu1 %1949, %v496_v11  }
  0x37   : > { %727 = vperm.xlu0 %1961, %v494_v1   ;;  %553 = vperm.xlu2 %1951, %v497_v12   ;;  %v2191_v1 = vld [vmem:[%s2064_s21 + $0xe8] sm:$0xff] }
  0x38   : > { %1926 = vmatpush.bf16.msra.mxu2 %v1666_v32  ;;  %v1781_v32 = vunpack.c.h.bf16 %v2216_v18 }
  0x3e   : > { %1952 = vset.pattern.permute.xlu1 %v1991_v3 }
  0x3f   : > { %787 = vperm.xlu0 %1961, %v509_v10   ;;  %618 = vperm.xlu2 %1951, %v510_v13   ;;  %v2205_v10 = vld [vmem:[%s2064_s21 + $0xf0] sm:$0xff] }
  0x40   : > { %739 = vperm.xlu1 %1952, %v497_v12   ;;  %v518_v12 = vld [vmem:[%s2064_s21 + $0xd0] sm:$0xff] }
  0x47   : > { %735 = vperm.xlu0 %1961, %v496_v11   ;;  %1953 = vset.pattern.permute.xlu2 %v1991_v3 }
  0x48   : > { %791 = vperm.xlu1 %1952, %v510_v13   ;;  %795 = vperm.xlu2 %1953, %v511_v8   ;;  %v1874_v8 = vld [vmem:[%s2049_s12 + $0x8] sm:$0xff]  }
  0x49   : > { %v1689_v11 = vunpack.c.h.bf16 %v1874_v8 }
  0x4f   : > { %743 = vperm.xlu0 %1961, %v498_v14  }
  0x50   : > { %1954 = vset.pattern.permute.xlu1 %v1992_v4  ;;  %1955 = vset.pattern.permute.xlu2 %v1992_v4 }
  0x51   : > { %558 = vperm.xlu1 %1954, %v498_v14   ;;  %563 = vperm.xlu2 %1955, %v499_v15   ;;  %v1688_v14 = vunpack.c.l.bf16 %v1874_v8 }
  0x57   : > { %803 = vperm.xlu0 %1961, %v513_v16  }
  0x59   : > { %1956 = vset.pattern.permute.xlu1 %v1991_v3  ;;  %628 = vperm.xlu2 %1955, %v512_v17  }
  0x5a   : > { %747 = vperm.xlu1 %1956, %v499_v15   ;;  %v1881_v15 = vld [vmem:[%s2049_s12 + $0x40] sm:$0xff]  }
  0x5b   : > { %v1716_v21 = vunpack.c.l.bf16 %v1881_v15  ;;  %v1717_v30 = vunpack.c.h.bf16 %v1881_v15 }
  0x5f   : > { %751 = vperm.xlu0 %1961, %v500_v20  }
  0x61   : > { %1958 = vset.pattern.permute.xlu2 %v1991_v3 }
  0x62   : > { %1957 = vset.pattern.permute.xlu1 %v1992_v4  ;;  %799 = vperm.xlu2 %1958, %v512_v17   ;;  %v1752_v17 = vunpack.c.l.bf16 %v2197_v5 }
  0x63   : > { %633 = vperm.xlu1 %1957, %v513_v16  }
  0x67   : > { %759 = vperm.xlu0 %1961, %v502_v23  }
  0x6a   : > { %1959 = vset.pattern.permute.xlu2 %v1992_v4 }
  0x6b   : > { %568 = vperm.xlu1 %1957, %v500_v20   ;;  %573 = vperm.xlu2 %1959, %v501_v24  }
  0x6e   : > { %v2126_v28 = vpop.permute.xlu2 %538 }
  0x6f   : > { %819 = vperm.xlu0 %1961, %v2121_v26  }
  0x73   : > { %1960 = vset.pattern.permute.xlu1 %v1991_v3  ;;  %638 = vperm.xlu2 %1959, %v514_v29  }
  0x74   : > { %755 = vperm.xlu1 %1960, %v501_v24   ;;  %v1780_v24 = vunpack.c.l.bf16 %v2216_v18  ;;  %v1912_v18 = vld [vmem:[%s2059_s18 + $0x48] sm:$0xff]  }
  0x76   : > { %v2140_v33 = vpop.permute.xlu2 %543 }
  0x77   : > { %767 = vperm.xlu0 %1961, %v2135_v31   ;;  %v689_v19 = vmul.f32 %v1689_v11, %v2140_v33 }
  0x7b   : > { %1962 = vset.pattern.permute.xlu2 %v1991_v3 }
  0x7c   : > { %807 = vperm.xlu1 %1960, %v514_v29   ;;  %811 = vperm.xlu2 %1962, %v2079_v9   ;;  %v1753_v9 = vunpack.c.h.bf16 %v2197_v5 }
  0x7e   : > { %v2145_v34 = vpop.permute.xlu2 %608 }
  0x7f   : > { %1970 = vset.pattern.permute.xlu0 %v1992_v4  ;;  %v702_v29 = vmul.f32 %v1716_v21, %v2145_v34 }
  0x80   : > { %663 = vperm.xlu0 %1970, %v2160_v45  }
  0x84   : > { %1963 = vset.pattern.permute.xlu1 %v1992_v4  ;;  %1964 = vset.pattern.permute.xlu2 %v1992_v4 }
  0x85   : > { %578 = vperm.xlu1 %1963, %v502_v23   ;;  %583 = vperm.xlu2 %1964, %v503_v35   ;;  %v688_v23 = vmul.f32 %v1688_v14, %v2126_v28 }
  0x87   : > { %v720_v38 = vpop.permute.xlu1 %719  ;;  %v529_v39 = vpop.permute.xlu0 %528 }
  0x88   : > { %v2156_v42 = vpop.permute.xlu2 %783  ;;  %v846_v46 = vmul.f32 %v1748_v40, %v720_v38  ;;  %v686_v47 = vmul.f32 %v1684_v41, %v529_v39  ;;  %1974 = vset.pattern.permute.xlu0 %v1991_v3  ;;  %v2236_v38 = vld [vmem:[%s2054_s15 + $0x10] sm:$0xff]  }
  0x89   : > { %775 = vperm.xlu0 %1974, %v2176_v58  }
  0x8a   : > { %v878_v53 = vadd.f32 %v846_v46, %v686_v47  ;;  %v1757_v46 = vunpack.c.h.bf16 %v2236_v38 }
  0x8c   : > { %v913_v59 = vsel %vm910_vm0, %v878_v53, %v1684_v41  ;;  %v1875_v41 = vld [vmem:[%s2049_s12 + $0x10] sm:$0xff]   ;;  %v1756_v53 = vunpack.c.l.bf16 %v2236_v38 }
  0x8d   : > { %1965 = vset.pattern.permute.xlu1 %v1991_v3  ;;  %648 = vperm.xlu2 %1964, %v516_v44   ;;  %v1693_v47 = vunpack.c.h.bf16 %v1875_v41 }
  0x8e   : > { %763 = vperm.xlu1 %1965, %v503_v35  }
  0x8f   : > { %v724_v51 = vpop.permute.xlu1 %723  ;;  %v534_v52 = vpop.permute.xlu0 %533 }
  0x90   : > { %v847_v54 = vmul.f32 %v1749_v48, %v724_v51  ;;  %v687_v55 = vmul.f32 %v1685_v49, %v534_v52  ;;  %v1692_v51 = vunpack.c.l.bf16 %v1875_v41  ;;  %v1882_v52 = vld [vmem:[%s2049_s12 + $0x48] sm:$0xff]  }
  0x91   : > { %v2171_v56 = vpop.permute.xlu2 %553  ;;  %835 = vperm.xlu0 %1974, %v2191_v1  }
  0x92   : > { %v879_v57 = vadd.f32 %v847_v54, %v687_v55 }
  0x94   : > { %v914_v60 = vsel %vm910_vm0, %v879_v57, %v1685_v49  ;;  %v2253_v57 = vld [vmem:[%s2054_s15 + $0x48] sm:$0xff]  }
  0x95   : > { %v945_v61 = vpack.c.bf16 %v914_v60, %v913_v59  ;;  %1967 = vset.pattern.permute.xlu2 %v1991_v3  ;;  %v507_v60 = vld [vmem:[%s2064_s21 + $0x78] sm:$0xff] }
  0x96   : > { %1966 = vset.pattern.permute.xlu1 %v1992_v4  ;;  %815 = vperm.xlu2 %1967, %v516_v44  }
  0x97   : > { %653 = vperm.xlu1 %1966, %v2121_v26   ;;  %v732_v62 = vpop.permute.xlu1 %731  ;;  %1037 = vmatmul.bf16.vlgmr.msra.gmra.mxu0 %v945_v61  ;;  %v2186_v63 = vpop.permute.xlu0 %623  ;;  %v691_v61 = vmul.f32 %v1693_v47, %v2171_v56 }
  0x98   : > { %v849_v16 = vmul.f32 %v1753_v9, %v732_v62  ;;  %v1784_v62 = vunpack.c.l.bf16 %v2253_v57 }
  0x99   : > { %v2188_v0 = vpop.permute.xlu2 %618  ;;  %839 = vperm.xlu0 %1974, %v2205_v10  }
  0x9a   : > { %v881_v25 = vadd.f32 %v849_v16, %v689_v19 }
  0x9c   : > { %v916_v33 = vsel %vm910_vm0, %v881_v25, %v1689_v11 }
  0x9e   : > { %1968 = vset.pattern.permute.xlu2 %v1992_v4 }
  0x9f   : > { %588 = vperm.xlu1 %1966, %v2135_v31   ;;  %v2200_v6 = vpop.permute.xlu0 %643  ;;  %593 = vperm.xlu2 %1968, %v505_v2   ;;  %v862_v31 = vmul.f32 %v1780_v24, %v2156_v42 }
  0xa0   : > { %v614_v7 = vpop.permute.xlu1 %613 }
  0xa1   : > { %v894_v39 = vadd.f32 %v862_v31, %v702_v29  ;;  %v703_v42 = vmul.f32 %v1717_v30, %v614_v7  ;;  %v1720_v7 = vunpack.c.l.bf16 %v1882_v52  ;;  %v2279_v31 = vld [vmem:[%s2054_s15 + $0x18] sm:$0xff]  }
  0xa2   : > { %v2209_v13 = vpop.permute.xlu2 %795 }
  0xa3   : > { %v929_v54 = vsel %vm910_vm0, %v894_v39, %v1716_v21 }
  0xa7   : > { %1969 = vset.pattern.permute.xlu1 %v1991_v3  ;;  %658 = vperm.xlu2 %1968, %v518_v12  }
  0xa8   : > { %771 = vperm.xlu1 %1969, %v505_v2   ;;  %v549_v20 = vpop.permute.xlu1 %548  ;;  %v1721_v2 = vunpack.c.h.bf16 %v1882_v52 }
  0xa9   : > { %v728_v22 = vpop.permute.xlu0 %727 }
  0xaa   : > { %v848_v26 = vmul.f32 %v1752_v17, %v728_v22  ;;  %v704_v22 = vmul.f32 %v1720_v7, %v2188_v0 }
  0xab   : > { %v2233_v35 = vpop.permute.xlu2 %563 }
  0xac   : > { %v880_v27 = vadd.f32 %v848_v26, %v688_v23 }
  0xae   : > { %v915_v28 = vsel %vm910_vm0, %v880_v27, %v1688_v14  ;;  %v690_v14 = vmul.f32 %v1692_v51, %v549_v20  ;;  %v520_v27 = vld [vmem:[%s2064_s21 + $0xe0] sm:$0xff] }
  0xaf   : > { %v946_v37 = vpack.c.bf16 %v916_v33, %v915_v28  ;;  %1971 = vset.pattern.permute.xlu2 %v1991_v3  ;;  %v1760_v33 = vunpack.c.l.bf16 %v2279_v31 }
  0xb0   : > { %823 = vperm.xlu1 %1969, %v518_v12   ;;  %827 = vperm.xlu2 %1971, %v2160_v45   ;;  %v1785_v12 = vunpack.c.h.bf16 %v2253_v57  ;;  %v1849_v57 = vunpack.c.h.bf16 %v1912_v18 }
  0xb1   : > { %v788_v34 = vpop.permute.xlu0 %787  ;;  %1042 = vmatmul.bf16.gmra.mxu0 %v946_v37 }
  0xb2   : > { %v863_v43 = vmul.f32 %v1781_v32, %v788_v34  ;;  %v740_v44 = vpop.permute.xlu1 %739  ;;  %v865_v20 = vmul.f32 %v1785_v12, %v2209_v13 }
  0xb3   : > { %v851_v45 = vmul.f32 %v1757_v46, %v740_v44  ;;  %v629_v8 = vpop.permute.xlu2 %628 }
  0xb4   : > { %v895_v49 = vadd.f32 %v863_v43, %v703_v42 }
  0xb5   : > { %v883_v15 = vadd.f32 %v851_v45, %v691_v61 }
  0xb6   : > { %v930_v55 = vsel %vm910_vm0, %v895_v49, %v1717_v30  ;;  %v1883_v49 = vld [vmem:[%s2049_s12 + $0x50] sm:$0xff]  }
  0xb7   : > { %v953_v59 = vpack.c.bf16 %v930_v55, %v929_v54  ;;  %v918_v25 = vsel %vm910_vm0, %v883_v15, %v1693_v47  ;;  %v1761_v47 = vunpack.c.h.bf16 %v2279_v31 }
  0xb8   : > { %1972 = vset.pattern.permute.xlu1 %v1992_v4  ;;  %1973 = vset.pattern.permute.xlu2 %v1992_v4 }
  0xb9   : > { %598 = vperm.xlu1 %1972, %v2176_v58   ;;  %v736_v11 = vpop.permute.xlu0 %735  ;;  %1077 = vmatmul.bf16.vlgmr.msra.gmra.mxu2 %v953_v59  ;;  %v705_v58 = vmul.f32 %v1721_v2, %v2186_v63  ;;  %v1876_v63 = vld [vmem:[%s2049_s12 + $0x18] sm:$0xff]  }
  0xba   : > { %v850_v56 = vmul.f32 %v1756_v53, %v736_v11  ;;  %v792_v16 = vpop.permute.xlu1 %791  ;;  %603 = vperm.xlu2 %1973, %v507_v60   ;;  %v1696_v37 = vunpack.c.l.bf16 %v1876_v63  ;;  %v1697_v42 = vunpack.c.h.bf16 %v1876_v63 }
  0xbb   : > { %v864_v21 = vmul.f32 %v1784_v62, %v792_v16  ;;  %v897_v30 = vadd.f32 %v865_v20, %v705_v58 }
  0xbc   : > { %v882_v19 = vadd.f32 %v850_v56, %v690_v14  ;;  %v800_v0 = vpop.permute.xlu2 %799  ;;  %v693_v45 = vmul.f32 %v1697_v42, %v2233_v35  ;;  %v1725_v56 = vunpack.c.h.bf16 %v1883_v49 }
  0xbd   : > { %v896_v29 = vadd.f32 %v864_v21, %v704_v22  ;;  %v932_v34 = vsel %vm910_vm0, %v897_v30, %v1721_v2 }
  0xbe   : > { %v917_v23 = vsel %vm910_vm0, %v882_v19, %v1692_v51  ;;  %v2293_v51 = vld [vmem:[%s2054_s15 + $0x50] sm:$0xff]   ;;  %v523_v19 = vld [vmem:[%s2064_s21 + $0xf8] sm:$0xff] }
  0xbf   : > { %v947_v26 = vpack.c.bf16 %v918_v25, %v917_v23  ;;  %v931_v28 = vsel %vm910_vm0, %v896_v29, %v1720_v7  ;;  %v1788_v61 = vunpack.c.l.bf16 %v2293_v51  ;;  %v1789_v7 = vunpack.c.h.bf16 %v2293_v51  ;;  %v2319_v29 = vld [vmem:[%s2054_s15 + $0x20] sm:$0xff]  }
  0xc0   : > { %v954_v39 = vpack.c.bf16 %v932_v34, %v931_v28  ;;  %v1764_v63 = vunpack.c.l.bf16 %v2319_v29 }
  0xc1   : > { %1975 = vset.pattern.permute.xlu1 %v1991_v3  ;;  %1047 = vmatmul.bf16.gmra.mxu0 %v947_v26  ;;  %v744_v41 = vpop.permute.xlu0 %743  ;;  %v866_v35 = vmul.f32 %v1788_v61, %v800_v0  ;;  %v1877_v26 = vld [vmem:[%s2049_s12 + $0x20] sm:$0xff]  }
  0xc2   : > { %779 = vperm.xlu1 %1975, %v507_v60   ;;  %668 = vperm.xlu2 %1973, %v520_v27   ;;  %v852_v43 = vmul.f32 %v1760_v33, %v744_v41  ;;  %v1724_v60 = vunpack.c.l.bf16 %v1883_v49  ;;  %v1700_v30 = vunpack.c.l.bf16 %v1877_v26 }
  0xc3   : > { %v559_v13 = vpop.permute.xlu1 %558 }
  0xc4   : > { %v692_v44 = vmul.f32 %v1696_v37, %v559_v13  ;;  %v706_v14 = vmul.f32 %v1724_v60, %v629_v8  ;;  %v1701_v13 = vunpack.c.h.bf16 %v1877_v26  ;;  %v1878_v26 = vld [vmem:[%s2049_s12 + $0x28] sm:$0xff]  }
  0xc5   : > { %v574_v55 = vpop.permute.xlu2 %573 }
  0xc6   : > { %v884_v54 = vadd.f32 %v852_v43, %v692_v44  ;;  %v898_v8 = vadd.f32 %v866_v35, %v706_v14  ;;  %v695_v44 = vmul.f32 %v1701_v13, %v574_v55 }
  0xc8   : > { %v919_v11 = vsel %vm910_vm0, %v884_v54, %v1696_v37  ;;  %v933_v25 = vsel %vm910_vm0, %v898_v8, %v1724_v60  ;;  %v1765_v37 = vunpack.c.h.bf16 %v2319_v29  ;;  %v1680_v54 = vld [vmem:[%s2670_s6 + $0x30] sm:$0xff] }
  0xc9   : > { %1082 = vmatmul.bf16.gmra.mxu2 %v954_v39  ;;  %v804_v16 = vpop.permute.xlu0 %803  ;;  %v2327_v39 = vld [vmem:[%s2054_s15 + $0x58] sm:$0xff]  }
  0xca   : > { %1976 = vset.pattern.permute.xlu1 %v1992_v4  ;;  %1977 = vset.pattern.permute.xlu2 %v1991_v3  ;;  %v867_v21 = vmul.f32 %v1789_v7, %v804_v16  ;;  %v2677_v49 = vunpack.c.h.bf16 %v2327_v39  ;;  %v1792_v55 = vunpack.c.l.bf16 %v2327_v39 }
  0xcb   : > { %673 = vperm.xlu1 %1976, %v2191_v1   ;;  %831 = vperm.xlu2 %1977, %v520_v27  }
  0xcc   : > { %v748_v52 = vpop.permute.xlu1 %747 }
  0xcd   : > { %v853_v59 = vmul.f32 %v1761_v47, %v748_v52  ;;  %v639_v20 = vpop.permute.xlu2 %638 }
  0xcf   : > { %v885_v2 = vadd.f32 %v853_v59, %v693_v45 }
  0xd1   : > { %v920_v1 = vsel %vm910_vm0, %v885_v2, %v1697_v42  ;;  %v752_v34 = vpop.permute.xlu0 %751  ;;  %v1884_v42 = vld [vmem:[%s2049_s12 + $0x58] sm:$0xff]  }
  0xd2   : > { %v948_v15 = vpack.c.bf16 %v920_v1, %v919_v11  ;;  %v854_v41 = vmul.f32 %v1764_v63, %v752_v34  ;;  %v1729_v59 = vunpack.c.h.bf16 %v1884_v42  ;;  %v1728_v11 = vunpack.c.l.bf16 %v1884_v42 }
  0xd3   : > { %678 = vperm.xlu1 %1976, %v2205_v10   ;;  %1978 = vset.pattern.permute.xlu2 %v1992_v4 }
  0xd4   : > { %1052 = vmatmul.bf16.gmra.mxu0 %v948_v15  ;;  %683 = vperm.xlu2 %1978, %v523_v19   ;;  %v1679_v15 = vld [vmem:[%s2670_s6 + $0x28] sm:$0xff]  ;;  %v709_v16 = vmul.f32 %v1729_v59, %v2200_v6 }
  0xd5   : > { %v634_v58 = vpop.permute.xlu1 %633 }
  0xd6   : > { %v707_v22 = vmul.f32 %v1725_v56, %v634_v58  ;;  %v812_v0 = vpop.permute.xlu2 %811  ;;  %v708_v58 = vmul.f32 %v1728_v11, %v639_v20 }
  0xd7   : > { %v869_v1 = vmul.f32 %v2677_v49, %v812_v0  ;;  %v2366_v0 = vld [vmem:[%s2054_s15 + $0x28] sm:$0xff]  }
  0xd8   : > { %v899_v23 = vadd.f32 %v867_v21, %v707_v22 }
  0xd9   : > { %v901_v8 = vadd.f32 %v869_v1, %v709_v16  ;;  %v760_v34 = vpop.permute.xlu0 %759 }
  0xda   : > { %v934_v10 = vsel %vm910_vm0, %v899_v23, %v1725_v56 }
  0xdb   : > { %1979 = vset.pattern.permute.xlu1 %v1991_v3  ;;  %v955_v4 = vpack.c.bf16 %v934_v10, %v933_v25  ;;  %v1681_v3 = vld [vmem:[%s2670_s6 + $0x38] sm:$0xff]  ;;  %v936_v10 = vsel %vm910_vm0, %v901_v8, %v1729_v59 }
  0xdc   : > { %843 = vperm.xlu1 %1979, %v523_v19   ;;  %1234 = vmatpush.bf16.msra.mxu1 %v1681_v3  ;;  %v1678_v19 = vld [vmem:[%s2670_s6 + $0x20] sm:$0xff] }
  0xdd   : > { %v569_v27 = vpop.permute.xlu1 %568  ;;  %1087 = vmatmul.bf16.gmra.mxu2 %v955_v4  ;;  %1927 = vmatpush.bf16.msra.mxu3 %v1681_v3  ;;  %v1677_v4 = vld [vmem:[%s2670_s6 + $0x18] sm:$0xff]  ;;  %v1675_v3 = vld [vmem:[%s2670_s6 + $0x8] sm:$0xff] }
  0xde   : > { %v694_v28 = vmul.f32 %v1700_v30, %v569_v27 }
  0xdf   : > { %v584_v2 = vpop.permute.xlu2 %583 }
  0xe0   : > { %v886_v52 = vadd.f32 %v854_v41, %v694_v28  ;;  %1235 = vmatpush.bf16.msra.mxu1 %v1680_v54  ;;  %v1768_v28 = vunpack.c.l.bf16 %v2366_v0  ;;  %v1705_v41 = vunpack.c.h.bf16 %v1878_v26 }
  0xe1   : > { %1928 = vmatpush.bf16.msra.mxu3 %v1680_v54  ;;  %v1674_v54 = vld [vmem:[%s2670_s6] sm:$0xff] }
  0xe2   : > { %v921_v14 = vsel %vm910_vm0, %v886_v52, %v1700_v30  ;;  %v1676_v30 = vld [vmem:[%s2670_s6 + $0x10] sm:$0xff]  ;;  %v856_v52 = vmul.f32 %v1768_v28, %v760_v34 }
  0xe3   : > { %v1879_v34 = vld [vmem:[%s2049_s12 + $0x30] sm:$0xff]  }
  0xe4   : > { %1236 = vmatpush.bf16.msra.mxu1 %v1679_v15 }
  0xe5   : > { %1929 = vmatpush.bf16.msra.mxu3 %v1679_v15 }
  0xe6   : > { %v756_v43 = vpop.permute.xlu1 %755 }
  0xe7   : > { %v855_v45 = vmul.f32 %v1765_v37, %v756_v43  ;;  %v649_v25 = vpop.permute.xlu2 %648 }
  0xe8   : > { %1237 = vmatpush.bf16.msra.mxu1 %v1678_v19 }
  0xe9   : > { %v887_v60 = vadd.f32 %v855_v45, %v695_v44  ;;  %1930 = vmatpush.bf16.msra.mxu3 %v1678_v19  ;;  %v1769_v44 = vunpack.c.h.bf16 %v2366_v0  ;;  %v1885_v45 = vld [vmem:[%s2049_s12 + $0x60] sm:$0xff]  }
  0xeb   : > { %v922_v35 = vsel %vm910_vm0, %v887_v60, %v1701_v13  ;;  %v1704_v13 = vunpack.c.l.bf16 %v1878_v26  ;;  %v2380_v60 = vld [vmem:[%s2054_s15 + $0x60] sm:$0xff]  }
  0xec   : > { %v949_v56 = vpack.c.bf16 %v922_v35, %v921_v14  ;;  %1238 = vmatpush.bf16.msra.mxu1 %v1677_v4  ;;  %v1732_v35 = vunpack.c.l.bf16 %v1885_v45  ;;  %v2676_v15 = vunpack.c.l.bf16 %v2380_v60  ;;  %v2675_v16 = vunpack.c.h.bf16 %v2380_v60 }
  0xed   : > { %1931 = vmatpush.bf16.msra.mxu3 %v1677_v4 }
  0xee   : > { %v808_v21 = vpop.permute.xlu1 %807  ;;  %1057 = vmatmul.bf16.gmra.mxu0 %v949_v56 }
  0xef   : > { %v868_v22 = vmul.f32 %v1792_v55, %v808_v21 }
  0xf0   : > { %1239 = vmatpush.bf16.msra.mxu1 %v1676_v30  ;;  %v816_v43 = vpop.permute.xlu2 %815 }
  0xf1   : > { %v900_v23 = vadd.f32 %v868_v22, %v708_v58  ;;  %1932 = vmatpush.bf16.msra.mxu3 %v1676_v30  ;;  %v870_v8 = vmul.f32 %v2676_v15, %v816_v43  ;;  %v1708_v43 = vunpack.c.l.bf16 %v1879_v34 }
  0xf3   : > { %v935_v6 = vsel %vm910_vm0, %v900_v23, %v1728_v11  ;;  %v697_v11 = vmul.f32 %v1705_v41, %v584_v2  ;;  %v710_v2 = vmul.f32 %v1732_v35, %v649_v25  ;;  %v1733_v23 = vunpack.c.h.bf16 %v1885_v45 }
  0xf4   : > { %v956_v20 = vpack.c.bf16 %v936_v10, %v935_v6  ;;  %1240 = vmatpush.bf16.msra.mxu1 %v1675_v3  ;;  %v820_v6 = vpop.permute.xlu0 %819 }
  0xf5   : > { %1933 = vmatpush.bf16.msra.mxu3 %v1675_v3  ;;  %v871_v4 = vmul.f32 %v2675_v16, %v820_v6 }
  0xf6   : > { %1092 = vmatmul.bf16.gmra.mxu2 %v956_v20  ;;  %v902_v20 = vadd.f32 %v870_v8, %v710_v2 }
  0xf7   : > { %v579_v27 = vpop.permute.xlu1 %578 }
  0xf8   : > { %v696_v42 = vmul.f32 %v1704_v13, %v579_v27  ;;  %1241 = vmatpush.bf16.msra.mxu1 %v1674_v54  ;;  %v937_v30 = vsel %vm910_vm0, %v902_v20, %v1732_v35 }
  0xf9   : > { %1934 = vmatpush.bf16.msra.mxu3 %v1674_v54  ;;  %v594_v19 = vpop.permute.xlu2 %593 }
  0xfa   : > { %v888_v1 = vadd.f32 %v856_v52, %v696_v42  ;;  %v2400_v42 = vld [vmem:[%s2054_s15 + $0x30] sm:$0xff]  }
  0xfb   : > { %v1772_v54 = vunpack.c.l.bf16 %v2400_v42  ;;  %v1773_v35 = vunpack.c.h.bf16 %v2400_v42 }
  0xfc   : > { %v923_v21 = vsel %vm910_vm0, %v888_v1, %v1704_v13  ;;  %v768_v52 = vpop.permute.xlu0 %767 }
 0x100   : > { %v764_v59 = vpop.permute.xlu1 %763 }
 0x101   : > { %v857_v14 = vmul.f32 %v1769_v44, %v764_v59  ;;  %v659_v13 = vpop.permute.xlu2 %658  ;;  %v2404_v59 = vld [vmem:[%s2054_s15 + $0x68] sm:$0xff]  }
 0x102   : > { %v2673_v2 = vunpack.c.h.bf16 %v2404_v59 }
 0x103   : > { %v889_v56 = vadd.f32 %v857_v14, %v697_v11  ;;  %v1709_v11 = vunpack.c.h.bf16 %v1879_v34  ;;  %v2409_v14 = vld [vmem:[%s2669_s5] ss:$0 sm:$0xff] }
 0x105   : > { %v924_v58 = vsel %vm910_vm0, %v889_v56, %v1705_v41  ;;  %v1886_v56 = vld [vmem:[%s2049_s12 + $0x68] sm:$0xff]  }
 0x106   : > { %v950_v22 = vpack.c.bf16 %v924_v58, %v923_v21  ;;  %v858_v21 = vmul.f32 %v1772_v54, %v768_v52  ;;  %v1737_v8 = vunpack.c.h.bf16 %v1886_v56  ;;  %v1736_v34 = vunpack.c.l.bf16 %v1886_v56 }
 0x108   : > { %1062 = vmatmul.bf16.gmra.mxu0 %v950_v22 }
 0x109   : > { %v654_v10 = vpop.permute.xlu1 %653 }
 0x10a   : > { %v711_v26 = vmul.f32 %v1733_v23, %v654_v10  ;;  %v828_v58 = vpop.permute.xlu2 %827 }
 0x10c   : > { %v903_v27 = vadd.f32 %v871_v4, %v711_v26  ;;  %v664_v26 = vpop.permute.xlu0 %663 }
 0x10e   : > { %v938_v25 = vsel %vm910_vm0, %v903_v27, %v1733_v23  ;;  %v699_v23 = vmul.f32 %v1709_v11, %v594_v19  ;;  %v873_v27 = vmul.f32 %v2673_v2, %v828_v58 }
 0x10f   : > { %v957_v3 = vpack.c.bf16 %v938_v25, %v937_v30 }
 0x111   : > { %v589_v41 = vpop.permute.xlu1 %588  ;;  %1097 = vmatmul.bf16.gmra.mxu2 %v957_v3  ;;  %v713_v3 = vmul.f32 %v1737_v8, %v664_v26 }
 0x112   : > { %v698_v1 = vmul.f32 %v1708_v43, %v589_v41  ;;  %v2674_v41 = vunpack.c.l.bf16 %v2404_v59 }
 0x114   : > { %v1038_v45 = vpop.f32.mrf.mxu0  ;;  %v890_v6 = vadd.f32 %v858_v21, %v698_v1 }
 0x115   : > { %v1039_v10 = vadd.f32 %v2409_v14, %v1038_v45 }
 0x116   : > { %v925_v45 = vsel %vm910_vm0, %v890_v6, %v1708_v43  ;;  %v1880_v6 = vld [vmem:[%s2049_s12 + $0x38] sm:$0xff]  }
 0x117   : > { %v1118_v52 = vmax.f32 %v1039_v10, 0.0 }
 0x11a   : > { %v772_v22 = vpop.permute.xlu1 %771 }
 0x11b   : > { %v859_v4 = vmul.f32 %v1773_v35, %v772_v22  ;;  %v905_v22 = vadd.f32 %v873_v27, %v713_v3  ;;  %v2435_v27 = vld [vmem:[%s2054_s15 + $0x38] sm:$0xff]   ;;  %v1712_v3 = vunpack.c.l.bf16 %v1880_v6 }
 0x11c   : > { %v1040_v20 = vpop.f32.mrf.mxu0 }
 0x11d   : > { %v891_v30 = vadd.f32 %v859_v4, %v699_v23  ;;  %v1041_v25 = vadd.f32 %v2409_v14, %v1040_v20  ;;  %v712_v4 = vmul.f32 %v1736_v34, %v659_v13  ;;  %v604_v20 = vpop.permute.xlu2 %603  ;;  %v940_v26 = vsel %vm910_vm0, %v905_v22, %v1737_v8  ;;  %v2443_v22 = vld [vmem:[%s2054_s15 + $0x70] sm:$0xff]  }
 0x11e   : > { %v2678_v2 = vunpack.c.h.bf16 %v2443_v22 }
 0x11f   : > { %v1119_v19 = vmax.f32 %v1041_v25, 0.0  ;;  %v926_v1 = vsel %vm910_vm0, %v891_v30, %v1709_v11  ;;  %v1776_v25 = vunpack.c.l.bf16 %v2435_v27 }
 0x120   : > { %v951_v21 = vpack.c.bf16 %v926_v1, %v925_v45  ;;  %v1713_v45 = vunpack.c.h.bf16 %v1880_v6 }
 0x121   : > { %v1150_v58 = vpack.c.bf16 %v1119_v19, %v1118_v52  ;;  %v776_v19 = vpop.permute.xlu0 %775 }
 0x122   : > { %v824_v23 = vpop.permute.xlu1 %823  ;;  %1067 = vmatmul.bf16.gmra.mxu0 %v951_v21  ;;  %v860_v8 = vmul.f32 %v1776_v25, %v776_v19  ;;  %v1887_v21 = vld [vmem:[%s2049_s12 + $0x70] sm:$0xff]  }
 0x123   : > { %v872_v56 = vmul.f32 %v2674_v41, %v824_v23  ;;  %1242 = vmatmul.bf16.vlgmr.msra.gmra.mxu1 %v1150_v58  ;;  %v701_v23 = vmul.f32 %v1713_v45, %v604_v20  ;;  %v1741_v15 = vunpack.c.h.bf16 %v1887_v21 }
 0x125   : > { %v904_v10 = vadd.f32 %v872_v56, %v712_v4  ;;  %v669_v30 = vpop.permute.xlu2 %668 }
 0x127   : > { %v939_v43 = vsel %vm910_vm0, %v904_v10, %v1736_v34  ;;  %v1777_v34 = vunpack.c.h.bf16 %v2435_v27 }
 0x128   : > { %v958_v11 = vpack.c.bf16 %v940_v26, %v939_v43  ;;  %v1740_v26 = vunpack.c.l.bf16 %v1887_v21  ;;  %v1804_v43 = vunpack.c.l.bf16 %v2443_v22 }
 0x12a   : > { %1102 = vmatmul.bf16.gmra.mxu2 %v958_v11 }
 0x12b   : > { %v599_v13 = vpop.permute.xlu1 %598 }
 0x12c   : > { %v700_v1 = vmul.f32 %v1712_v3, %v599_v13 }
 0x12d   : > { %v832_v6 = vpop.permute.xlu2 %831 }
 0x12e   : > { %v1043_v52 = vpop.f32.mrf.mxu0  ;;  %v892_v4 = vadd.f32 %v860_v8, %v700_v1  ;;  %v714_v8 = vmul.f32 %v1740_v26, %v669_v30  ;;  %v874_v1 = vmul.f32 %v1804_v43, %v832_v6 }
 0x12f   : > { %v1044_v56 = vadd.f32 %v2409_v14, %v1043_v52 }
 0x130   : > { %v927_v20 = vsel %vm910_vm0, %v892_v4, %v1712_v3 }
 0x131   : > { %v1120_v41 = vmax.f32 %v1044_v56, 0.0 }
 0x134   : > { %v780_v58 = vpop.permute.xlu1 %779 }
 0x135   : > { %v861_v10 = vmul.f32 %v1777_v34, %v780_v58 }
 0x136   : > { %v1045_v11 = vpop.f32.mrf.mxu0 }
 0x137   : > { %v893_v19 = vadd.f32 %v861_v10, %v701_v23  ;;  %v1046_v13 = vadd.f32 %v2409_v14, %v1045_v11  ;;  %v836_v10 = vpop.permute.xlu0 %835  ;;  %v906_v11 = vadd.f32 %v874_v1, %v714_v8 }
 0x138   : > { %v875_v3 = vmul.f32 %v2678_v2, %v836_v10 }
 0x139   : > { %v1121_v16 = vmax.f32 %v1046_v13, 0.0  ;;  %v928_v52 = vsel %vm910_vm0, %v893_v19, %v1713_v45  ;;  %v941_v6 = vsel %vm910_vm0, %v906_v11, %v1740_v26  ;;  %v1888_v13 = vld [vmem:[%s2049_s12 + $0x78] sm:$0xff]  }
 0x13a   : > { %v952_v58 = vpack.c.bf16 %v928_v52, %v927_v20  ;;  %v2466_v20 = vld [vmem:[%s2054_s15 + $0x78] sm:$0xff]   ;;  %v1744_v26 = vunpack.c.l.bf16 %v1888_v13 }
 0x13b   : > { %v1151_v49 = vpack.c.bf16 %v1121_v16, %v1120_v41 }
 0x13c   : > { %1072 = vmatmul.bf16.gmra.mxu0 %v952_v58  ;;  %v1078_v23 = vpop.f32.mrf.mxu2 }
 0x13d   : > { %v674_v56 = vpop.permute.xlu1 %673  ;;  %1247 = vmatmul.bf16.gmra.mxu1 %v1151_v49  ;;  %v1079_v41 = vadd.f32 %v2409_v14, %v1078_v23 }
 0x13e   : > { %v715_v4 = vmul.f32 %v1741_v15, %v674_v56  ;;  %v1048_v45 = vpop.f32.mrf.mxu0 }
 0x13f   : > { %v1049_v49 = vadd.f32 %v2409_v14, %v1048_v45  ;;  %v1134_v58 = vmax.f32 %v1079_v41, 0.0 }
 0x140   : > { %v907_v30 = vadd.f32 %v875_v3, %v715_v4  ;;  %v1745_v4 = vunpack.c.h.bf16 %v1888_v13 }
 0x141   : > { %v1122_v23 = vmax.f32 %v1049_v49, 0.0 }
 0x142   : > { %v942_v16 = vsel %vm910_vm0, %v907_v30, %v1741_v15  ;;  %v2680_v15 = vunpack.c.l.bf16 %v2466_v20  ;;  %v840_v30 = vpop.permute.xlu0 %839 }
 0x143   : > { %v959_v21 = vpack.c.bf16 %v942_v16, %v941_v6  ;;  %v684_v6 = vpop.permute.xlu2 %683 }
 0x144   : > { %v1080_v19 = vpop.f32.mrf.mxu2  ;;  %v876_v41 = vmul.f32 %v2680_v15, %v840_v30 }
 0x145   : > { %v1081_v52 = vadd.f32 %v2409_v14, %v1080_v19  ;;  %v679_v8 = vpop.permute.xlu1 %678  ;;  %1107 = vmatmul.bf16.gmra.mxu2 %v959_v21  ;;  %v2679_v19 = vunpack.c.h.bf16 %v2466_v20 }
 0x146   : > { %v1050_v1 = vpop.f32.mrf.mxu0  ;;  %v716_v16 = vmul.f32 %v1744_v26, %v679_v8 }
 0x147   : > { %v1135_v10 = vmax.f32 %v1081_v52, 0.0  ;;  %v1051_v56 = vadd.f32 %v2409_v14, %v1050_v1  ;;  %v717_v52 = vmul.f32 %v1745_v4, %v684_v6 }
 0x148   : > { %v908_v2 = vadd.f32 %v876_v41, %v716_v16 }
 0x149   : > { %v1123_v11 = vmax.f32 %v1051_v56, 0.0  ;;  %v1158_v3 = vpack.c.bf16 %v1135_v10, %v1134_v58 }
 0x14a   : > { %v943_v8 = vsel %vm910_vm0, %v908_v2, %v1744_v26 }
 0x14b   : > { %1282 = vmatmul.bf16.vlgmr.msra.gmra.mxu3 %v1158_v3  ;;  %v1152_v45 = vpack.c.bf16 %v1123_v11, %v1122_v23 }
 0x14c   : > { %v1083_v21 = vpop.f32.mrf.mxu2 }
 0x14d   : > { %1252 = vmatmul.bf16.gmra.mxu1 %v1152_v45  ;;  %v1084_v10 = vadd.f32 %v2409_v14, %v1083_v21 }
 0x14e   : > { %v844_v1 = vpop.permute.xlu1 %843 }
 0x14f   : > { %v877_v49 = vmul.f32 %v2679_v19, %v844_v1  ;;  %v1136_v30 = vmax.f32 %v1084_v10, 0.0 }
 0x151   : > { %v909_v58 = vadd.f32 %v877_v49, %v717_v52  ;;  %v1053_v13 = vpop.f32.mrf.mxu0 }
 0x152   : > { %v1054_v16 = vadd.f32 %v2409_v14, %v1053_v13 }
 0x153   : > { %v944_v56 = vsel %vm910_vm0, %v909_v58, %v1745_v4 }
 0x154   : > { %v1085_v23 = vpop.f32.mrf.mxu2  ;;  %v960_v11 = vpack.c.bf16 %v944_v56, %v943_v8  ;;  %v1124_v21 = vmax.f32 %v1054_v16, 0.0 }
 0x155   : > { %v1086_v3 = vadd.f32 %v2409_v14, %v1085_v23 }
 0x156   : > { %1112 = vmatmul.bf16.gmra.mxu2 %v960_v11 }
 0x157   : > { %v1137_v6 = vmax.f32 %v1086_v3, 0.0 }
 0x159   : > { %v1055_v45 = vpop.f32.mrf.mxu0  ;;  %v1159_v41 = vpack.c.bf16 %v1137_v6, %v1136_v30 }
 0x15a   : > { %v1056_v52 = vadd.f32 %v2409_v14, %v1055_v45 }
 0x15b   : > { %1287 = vmatmul.bf16.gmra.mxu3 %v1159_v41 }
 0x15c   : > { %v1125_v1 = vmax.f32 %v1056_v52, 0.0 }
 0x15e   : > { %v1153_v2 = vpack.c.bf16 %v1125_v1, %v1124_v21 }
 0x160   : > { %v1088_v26 = vpop.f32.mrf.mxu2  ;;  %1257 = vmatmul.bf16.gmra.mxu1 %v1153_v2 }
 0x161   : > { %v1089_v50 = vadd.f32 %v2409_v14, %v1088_v26 }
 0x163   : > { %v1138_v58 = vmax.f32 %v1089_v50, 0.0 }
 0x168   : > { %v1090_v4 = vpop.f32.mrf.mxu2 }
 0x169   : > { %v1091_v49 = vadd.f32 %v2409_v14, %v1090_v4 }
 0x16b   : > { %v1139_v10 = vmax.f32 %v1091_v49, 0.0  ;;  %v1058_v8 = vpop.f32.mrf.mxu0 }
 0x16c   : > { %v1059_v13 = vadd.f32 %v2409_v14, %v1058_v8 }
 0x16d   : > { %v1160_v56 = vpack.c.bf16 %v1139_v10, %v1138_v58 }
 0x16e   : > { %v1126_v3 = vmax.f32 %v1059_v13, 0.0 }
 0x16f   : > { %1292 = vmatmul.bf16.gmra.mxu3 %v1160_v56 }
 0x173   : > { %v1060_v23 = vpop.f32.mrf.mxu0 }
 0x174   : > { %v1061_v11 = vadd.f32 %v2409_v14, %v1060_v23 }
 0x176   : > { %v1127_v30 = vmax.f32 %v1061_v11, 0.0 }
 0x178   : > { %v1154_v6 = vpack.c.bf16 %v1127_v30, %v1126_v3 }
 0x179   : > { %v1093_v16 = vpop.f32.mrf.mxu2 }
 0x17a   : > { %1262 = vmatmul.bf16.gmra.mxu1 %v1154_v6  ;;  %v1094_v45 = vadd.f32 %v2409_v14, %v1093_v16  ;;  %v2498_v16 = vld [vmem:[%s2671_s7] ss:$0 sm:$0xff] }
 0x17c   : > { %v1140_v21 = vmax.f32 %v1094_v45, 0.0 }
 0x181   : > { %v1095_v41 = vpop.f32.mrf.mxu2 }
 0x182   : > { %v1096_v52 = vadd.f32 %v2409_v14, %v1095_v41 }
 0x184   : > { %v1141_v1 = vmax.f32 %v1096_v52, 0.0 }
 0x185   : > { %v1063_v2 = vpop.f32.mrf.mxu0 }
 0x186   : > { %v1161_v26 = vpack.c.bf16 %v1141_v1, %v1140_v21  ;;  %v1064_v50 = vadd.f32 %v2409_v14, %v1063_v2 }
 0x188   : > { %1297 = vmatmul.bf16.gmra.mxu3 %v1161_v26  ;;  %v1128_v58 = vmax.f32 %v1064_v50, 0.0  ;;  %v1811_v26 = vld [vmem:[%s2059_s18] sm:$0xff]  }
 0x18d   : > { %v1065_v4 = vpop.f32.mrf.mxu0 }
 0x18e   : > { %v1066_v49 = vadd.f32 %v2409_v14, %v1065_v4 }
 0x190   : > { %v1129_v10 = vmax.f32 %v1066_v49, 0.0 }
 0x192   : > { %v1155_v8 = vpack.c.bf16 %v1129_v10, %v1128_v58 }
 0x194   : > { %v1098_v56 = vpop.f32.mrf.mxu2  ;;  %1267 = vmatmul.bf16.gmra.mxu1 %v1155_v8  ;;  %v1812_v8 = vunpack.c.l.bf16 %v1811_v26 }
 0x195   : > { %v1099_v13 = vadd.f32 %v2409_v14, %v1098_v56 }
 0x197   : > { %v1142_v3 = vmax.f32 %v1099_v13, 0.0 }
 0x19c   : > { %v1100_v23 = vpop.f32.mrf.mxu2 }
 0x19d   : > { %v1101_v11 = vadd.f32 %v2409_v14, %v1100_v23  ;;  %v1813_v23 = vunpack.c.h.bf16 %v1811_v26 }
 0x19f   : > { %v1143_v30 = vmax.f32 %v1101_v11, 0.0  ;;  %v1068_v6 = vpop.f32.mrf.mxu0 }
 0x1a0   : > { %v1243_v45 = vpop.f32.mrf.mxu1  ;;  %v1069_v21 = vadd.f32 %v2409_v14, %v1068_v6 }
 0x1a1   : > { %v1162_v41 = vpack.c.bf16 %v1143_v30, %v1142_v3  ;;  %v1244_v52 = vadd.f32 %v2498_v16, %v1243_v45 }
 0x1a2   : > { %v1130_v58 = vmax.f32 %v1069_v21, 0.0 }
 0x1a3   : > { %1302 = vmatmul.bf16.gmra.mxu3 %v1162_v41  ;;  %v1323_v1 = vsub.f32 %v1244_v52, %v1748_v40 }
 0x1a5   : > { %v1420_v56 = vmul.f32 %v1323_v1, %v1323_v1 }
 0x1a7   : > { %v1070_v2 = vpop.f32.mrf.mxu0  ;;  %v1452_v40 = vmul.f32 %v1812_v8, %v1420_v56 }
 0x1a8   : > { %v1071_v50 = vadd.f32 %v2409_v14, %v1070_v2  ;;  %v1245_v4 = vpop.f32.mrf.mxu1 }
 0x1a9   : > { %v1246_v49 = vadd.f32 %v2498_v16, %v1245_v4 }
 0x1aa   : > { %v1131_v10 = vmax.f32 %v1071_v50, 0.0 }
 0x1ab   : > { %v1324_v13 = vsub.f32 %v1246_v49, %v1749_v48 }
 0x1ac   : > { %v1156_v11 = vpack.c.bf16 %v1131_v10, %v1130_v58  ;;  %v1816_v58 = vunpack.c.l.bf16 %v1904_v36 }
 0x1ad   : > { %v1421_v3 = vmul.f32 %v1324_v13, %v1324_v13  ;;  %v1103_v30 = vpop.f32.mrf.mxu2 }
 0x1ae   : > { %1272 = vmatmul.bf16.gmra.mxu1 %v1156_v11  ;;  %v1104_v41 = vadd.f32 %v2409_v14, %v1103_v30 }
 0x1af   : > { %v1453_v6 = vmul.f32 %v1813_v23, %v1421_v3 }
 0x1b0   : > { %v1144_v2 = vmax.f32 %v1104_v41, 0.0 }
 0x1b1   : > { %v1484_v45 = vadd.f32 %v1453_v6, %v1452_v40 }
 0x1b5   : > { %v1105_v52 = vpop.f32.mrf.mxu2 }
 0x1b6   : > { %v1106_v21 = vadd.f32 %v2409_v14, %v1105_v52  ;;  %v1817_v52 = vunpack.c.h.bf16 %v1904_v36 }
 0x1b8   : > { %v1145_v50 = vmax.f32 %v1106_v21, 0.0 }
 0x1b9   : > { %v1073_v1 = vpop.f32.mrf.mxu0 }
 0x1ba   : > { %v1248_v4 = vpop.f32.mrf.mxu1  ;;  %v1163_v48 = vpack.c.bf16 %v1145_v50, %v1144_v2  ;;  %v1074_v8 = vadd.f32 %v2409_v14, %v1073_v1 }
 0x1bb   : > { %v1249_v26 = vadd.f32 %v2498_v16, %v1248_v4  ;;  %v1905_v4 = vld [vmem:[%s2059_s18 + $0x10] sm:$0xff]  }
 0x1bc   : > { %1307 = vmatmul.bf16.gmra.mxu3 %v1163_v48  ;;  %v1132_v40 = vmax.f32 %v1074_v8, 0.0 }
 0x1bd   : > { %v1325_v49 = vsub.f32 %v1249_v26, %v1752_v17 }
 0x1bf   : > { %v1422_v10 = vmul.f32 %v1325_v49, %v1325_v49  ;;  %v1820_v49 = vunpack.c.l.bf16 %v1905_v4 }
 0x1c1   : > { %v1454_v56 = vmul.f32 %v1816_v58, %v1422_v10  ;;  %v1075_v13 = vpop.f32.mrf.mxu0 }
 0x1c2   : > { %v1076_v23 = vadd.f32 %v2409_v14, %v1075_v13  ;;  %v1250_v11 = vpop.f32.mrf.mxu1 }
 0x1c3   : > { %v1485_v3 = vadd.f32 %v1484_v45, %v1454_v56  ;;  %v1251_v30 = vadd.f32 %v2498_v16, %v1250_v11 }
 0x1c4   : > { %v1133_v6 = vmax.f32 %v1076_v23, 0.0 }
 0x1c5   : > { %v1326_v41 = vsub.f32 %v1251_v30, %v1753_v9 }
 0x1c6   : > { %v1157_v17 = vpack.c.bf16 %v1133_v6, %v1132_v40 }
 0x1c7   : > { %v1423_v21 = vmul.f32 %v1326_v41, %v1326_v41 }
 0x1c8   : > { %v1108_v2 = vpop.f32.mrf.mxu2  ;;  %1277 = vmatmul.bf16.gmra.mxu1 %v1157_v17 }
 0x1c9   : > { %v1455_v50 = vmul.f32 %v1817_v52, %v1423_v21  ;;  %v1109_v58 = vadd.f32 %v2409_v14, %v1108_v2 }
 0x1ca   : > { %v1253_v1 = vpop.f32.mrf.mxu1 }
 0x1cb   : > { %v1486_v48 = vadd.f32 %v1485_v3, %v1455_v50  ;;  %v1254_v26 = vadd.f32 %v2498_v16, %v1253_v1  ;;  %v1146_v8 = vmax.f32 %v1109_v58, 0.0 }
 0x1cd   : > { %v1327_v45 = vsub.f32 %v1254_v26, %v1756_v53 }
 0x1ce   : > { %v2528_v52 = vpop.f32.mrf.mxu3 }
 0x1cf   : > { %v1424_v10 = vmul.f32 %v1327_v45, %v1327_v45 }
 0x1d0   : > { %v1110_v5 = vpop.f32.mrf.mxu2 }
 0x1d1   : > { %v1456_v9 = vmul.f32 %v1820_v49, %v1424_v10  ;;  %v1111_v36 = vadd.f32 %v2409_v14, %v1110_v5 }
 0x1d2   : > { %v1255_v17 = vpop.f32.mrf.mxu1 }
 0x1d3   : > { %v1487_v56 = vadd.f32 %v1486_v48, %v1456_v9  ;;  %v1147_v13 = vmax.f32 %v1111_v36, 0.0  ;;  %v1256_v36 = vadd.f32 %v2498_v16, %v1255_v17 }
 0x1d5   : > { %v1164_v23 = vpack.c.bf16 %v1147_v13, %v1146_v8 }
 0x1d6   : > { %v2530_v21 = vpop.f32.mrf.mxu3 }
 0x1d7   : > { %1312 = vmatmul.bf16.gmra.mxu3 %v1164_v23  ;;  %v1328_v23 = vsub.f32 %v1256_v36, %v1757_v46 }
 0x1d9   : > { %v1113_v11 = vpop.f32.mrf.mxu2 }
 0x1da   : > { %v1114_v3 = vadd.f32 %v2409_v14, %v1113_v11 }
 0x1dc   : > { %v1148_v53 = vmax.f32 %v1114_v3, 0.0 }
 0x1dd   : > { %v1258_v2 = vpop.f32.mrf.mxu1 }
 0x1de   : > { %v2532_v50 = vpop.f32.mrf.mxu3  ;;  %v1259_v8 = vadd.f32 %v2498_v16, %v1258_v2 }
 0x1e1   : > { %v1115_v30 = vpop.f32.mrf.mxu2 }
 0x1e2   : > { %v1116_v40 = vadd.f32 %v2409_v14, %v1115_v30  ;;  %v1329_v30 = vsub.f32 %v1259_v8, %v1760_v33 }
 0x1e4   : > { %v1149_v6 = vmax.f32 %v1116_v40, 0.0  ;;  %v1426_v38 = vmul.f32 %v1329_v30, %v1329_v30 }
 0x1e5   : > { %v1260_v1 = vpop.f32.mrf.mxu1 }
 0x1e6   : > { %v1165_v41 = vpack.c.bf16 %v1149_v6, %v1148_v53  ;;  %v2534_v48 = vpop.f32.mrf.mxu3  ;;  %v1261_v11 = vadd.f32 %v2498_v16, %v1260_v1  ;;  %v1906_v53 = vld [vmem:[%s2059_s18 + $0x18] sm:$0xff]   ;;  %v1821_v6 = vunpack.c.h.bf16 %v1905_v4  ;;  %v1907_v1 = vld [vmem:[%s2059_s18 + $0x20] sm:$0xff]  }
 0x1e7   : > { %v1824_v19 = vunpack.c.l.bf16 %v1906_v53  ;;  %v1825_v8 = vunpack.c.h.bf16 %v1906_v53  ;;  %v1908_v53 = vld [vmem:[%s2059_s18 + $0x28] sm:$0xff]  }
 0x1e8   : > { %1317 = vmatmul.bf16.gmra.mxu3 %v1165_v41  ;;  %v1425_v41 = vmul.f32 %v1328_v23, %v1328_v23  ;;  %v1330_v17 = vsub.f32 %v1261_v11, %v1761_v47 }
 0x1e9   : > { %v1458_v47 = vmul.f32 %v1824_v19, %v1426_v38  ;;  %v1833_v38 = vunpack.c.h.bf16 %v1908_v53 }
 0x1ea   : > { %v1457_v33 = vmul.f32 %v1821_v6, %v1425_v41  ;;  %v1829_v6 = vunpack.c.h.bf16 %v1907_v1 }
 0x1f2   : > { %v2536_v45 = vpop.f32.mrf.mxu3 }
 0x1f7   : > { %v1263_v26 = vpop.f32.mrf.mxu1 }
 0x1f8   : > { %v1264_v40 = vadd.f32 %v2498_v16, %v1263_v26  ;;  %v1427_v26 = vmul.f32 %v1330_v17, %v1330_v17  ;;  %v1832_v17 = vunpack.c.l.bf16 %v1908_v53 }
 0x1fa   : > { %v2538_v49 = vpop.f32.mrf.mxu3  ;;  %v1331_v46 = vsub.f32 %v1264_v40, %v1764_v63  ;;  %v1459_v40 = vmul.f32 %v1825_v8, %v1427_v26 }
 0x1fc   : > { %v1428_v23 = vmul.f32 %v1331_v46, %v1331_v46 }
 0x1ff   : > { %v1265_v14 = vpop.f32.mrf.mxu1 }
 0x200   : > { %v1266_v2 = vadd.f32 %v2498_v16, %v1265_v14  ;;  %v1828_v14 = vunpack.c.l.bf16 %v1907_v1 }
 0x202   : > { %v1332_v4 = vsub.f32 %v1266_v2, %v1765_v37 }
 0x204   : > { %v1429_v41 = vmul.f32 %v1332_v4, %v1332_v4 }
 0x20b   : > { %v2540_v10 = vpop.f32.mrf.mxu3 }
 0x211   : > { %v1268_v58 = vpop.f32.mrf.mxu1 }
 0x212   : > { %v1269_v36 = vadd.f32 %v2498_v16, %v1268_v58  ;;  %v1488_v58 = vadd.f32 %v1487_v56, %v1457_v33  ;;  %v1909_v56 = vld [vmem:[%s2059_s18 + $0x30] sm:$0xff]  }
 0x213   : > { %v2542_v9 = vpop.f32.mrf.mxu3  ;;  %v1836_v8 = vunpack.c.l.bf16 %v1909_v56  ;;  %v1837_v42 = vunpack.c.h.bf16 %v1909_v56 }
 0x214   : > { %v1333_v11 = vsub.f32 %v1269_v36, %v1768_v28  ;;  %v1489_v19 = vadd.f32 %v1488_v58, %v1458_v47  ;;  %v1461_v36 = vmul.f32 %v1829_v6, %v1429_v41  ;;  %v1910_v47 = vld [vmem:[%s2059_s18 + $0x38] sm:$0xff]  }
 0x216   : > { %v1430_v2 = vmul.f32 %v1333_v11, %v1333_v11  ;;  %v1286_v11 = vadd.f32 %v2498_v16, %v2530_v21 }
 0x218   : > { %v1462_v33 = vmul.f32 %v1832_v17, %v1430_v2  ;;  %v1340_v21 = vsub.f32 %v1286_v11, %v1781_v32  ;;  %v1914_v11 = vld [vmem:[%s2059_s18 + $0x58] sm:$0xff]  }
 0x219   : > { %v1270_v5 = vpop.f32.mrf.mxu1 }
 0x21a   : > { %v1271_v31 = vadd.f32 %v2498_v16, %v1270_v5  ;;  %v1460_v5 = vmul.f32 %v1828_v14, %v1428_v23  ;;  %v1437_v27 = vmul.f32 %v1340_v21, %v1340_v21 }
 0x21c   : > { %v1334_v29 = vsub.f32 %v1271_v31, %v1769_v44  ;;  %v1284_v31 = vadd.f32 %v2498_v16, %v2528_v52  ;;  %v1289_v52 = vadd.f32 %v2498_v16, %v2532_v50  ;;  %v1294_v50 = vadd.f32 %v2498_v16, %v2536_v45 }
 0x21d   : > { %v1848_v45 = vunpack.c.l.bf16 %v1912_v18 }
 0x21e   : > { %v1431_v1 = vmul.f32 %v1334_v29, %v1334_v29  ;;  %v1339_v6 = vsub.f32 %v1284_v31, %v1780_v24  ;;  %v1341_v56 = vsub.f32 %v1289_v52, %v1784_v62  ;;  %v1856_v52 = vunpack.c.l.bf16 %v1914_v11 }
 0x220   : > { %v1463_v23 = vmul.f32 %v1833_v38, %v1431_v1  ;;  %v1436_v38 = vmul.f32 %v1339_v6, %v1339_v6 }
 0x226   : > { %v2549_v3 = vpop.f32.mrf.mxu3 }
 0x22b   : > { %v1273_v13 = vpop.f32.mrf.mxu1 }
 0x22c   : > { %v1274_v63 = vadd.f32 %v2498_v16, %v1273_v13  ;;  %v1490_v13 = vadd.f32 %v1489_v19, %v1459_v40  ;;  %v1840_v40 = vunpack.c.l.bf16 %v1910_v47 }
 0x22e   : > { %v2568_v30 = vpop.f32.mrf.mxu3  ;;  %v1335_v28 = vsub.f32 %v1274_v63, %v1772_v54 }
 0x22f   : > { %v1306_v6 = vadd.f32 %v2498_v16, %v2568_v30  ;;  %v2683_v30 = vunpack.c.h.bf16 %v2380_v60 }
 0x230   : > { %v1432_v26 = vmul.f32 %v1335_v28, %v1335_v28  ;;  %v1841_v28 = vunpack.c.h.bf16 %v1910_v47  ;;  %v1301_v47 = vadd.f32 %v2498_v16, %v2542_v9 }
 0x232   : > { %v1464_v58 = vmul.f32 %v1836_v8, %v1432_v26  ;;  %v1913_v8 = vld [vmem:[%s2059_s18 + $0x50] sm:$0xff]   ;;  %v1299_v26 = vadd.f32 %v2498_v16, %v2540_v10  ;;  %v1304_v10 = vadd.f32 %v2498_v16, %v2549_v3 }
 0x233   : > { %v1275_v15 = vpop.f32.mrf.mxu1  ;;  %v1853_v51 = vunpack.c.h.bf16 %v1913_v8 }
 0x234   : > { %v1276_v37 = vadd.f32 %v2498_v16, %v1275_v15  ;;  %v1491_v15 = vadd.f32 %v1490_v13, %v1460_v5  ;;  %v1291_v5 = vadd.f32 %v2498_v16, %v2534_v48 }
 0x236   : > { %v1336_v0 = vsub.f32 %v1276_v37, %v1773_v35  ;;  %v1492_v14 = vadd.f32 %v1491_v15, %v1461_v36  ;;  %v1342_v1 = vsub.f32 %v1291_v5, %v1785_v12  ;;  %v1343_v15 = vsub.f32 %v1294_v50, %v1788_v61 }
 0x237   : > { %v1857_v5 = vunpack.c.h.bf16 %v1914_v11 }
 0x238   : > { %v1433_v35 = vmul.f32 %v1336_v0, %v1336_v0  ;;  %v1493_v63 = vadd.f32 %v1492_v14, %v1462_v33  ;;  %v1438_v33 = vmul.f32 %v1341_v56, %v1341_v56  ;;  %v1439_v12 = vmul.f32 %v1342_v1, %v1342_v1 }
 0x239   : > { %v1440_v61 = vmul.f32 %v1343_v15, %v1343_v15  ;;  %v2684_v56 = vunpack.c.l.bf16 %v2404_v59  ;;  %v2685_v1 = vunpack.c.h.bf16 %v2404_v59 }
 0x23a   : > { %v1494_v29 = vadd.f32 %v1493_v63, %v1463_v23  ;;  %v1465_v37 = vmul.f32 %v1837_v42, %v1433_v35  ;;  %v1852_v23 = vunpack.c.l.bf16 %v1913_v8  ;;  %v1470_v42 = vmul.f32 %v1848_v45, %v1438_v33 }
 0x23b   : > { %v1345_v35 = vsub.f32 %v1299_v26, %v1792_v55  ;;  %v2682_v55 = vunpack.c.l.bf16 %v2380_v60 }
 0x23c   : > { %v1495_v17 = vadd.f32 %v1494_v29, %v1464_v58 }
 0x23d   : > { %v1442_v29 = vmul.f32 %v1345_v35, %v1345_v35  ;;  %v2686_v35 = vunpack.c.h.bf16 %v2443_v22 }
 0x23e   : > { %v1496_v32 = vadd.f32 %v1495_v17, %v1465_v37  ;;  %v1347_v37 = vsub.f32 %v1304_v10, %v2682_v55 }
 0x23f   : > { %v2580_v4 = vpop.f32.mrf.mxu3  ;;  %v1474_v50 = vmul.f32 %v1856_v52, %v1442_v29 }
 0x240   : > { %v1309_v3 = vadd.f32 %v2498_v16, %v2580_v4 }
 0x242   : > { %v1349_v18 = vsub.f32 %v1309_v3, %v2684_v56 }
 0x244   : > { %v1446_v15 = vmul.f32 %v1349_v18, %v1349_v18 }
 0x245   : > { %v1278_v46 = vpop.f32.mrf.mxu1 }
 0x246   : > { %v1279_v44 = vadd.f32 %v2498_v16, %v1278_v46 }
 0x247   : > { %v1310_v46 = vpop.f32.mrf.mxu3 }
 0x248   : > { %v1337_v54 = vsub.f32 %v1279_v44, %v1776_v25  ;;  %v1911_v25 = vld [vmem:[%s2059_s18 + $0x40] sm:$0xff]  }
 0x249   : > { %v1844_v13 = vunpack.c.l.bf16 %v1911_v25  ;;  %v1845_v48 = vunpack.c.h.bf16 %v1911_v25  ;;  %v1472_v25 = vmul.f32 %v1852_v23, %v1440_v61 }
 0x24a   : > { %v1434_v53 = vmul.f32 %v1337_v54, %v1337_v54 }
 0x24b   : > { %v1468_v62 = vmul.f32 %v1844_v13, %v1436_v38  ;;  %v1469_v31 = vmul.f32 %v1845_v48, %v1437_v27  ;;  %v1444_v38 = vmul.f32 %v1347_v37, %v1347_v37  ;;  %v1916_v48 = vld [vmem:[%s2059_s18 + $0x68] sm:$0xff]   ;;  %v2688_v37 = vunpack.c.h.bf16 %v2466_v20 }
 0x24c   : > { %v1466_v2 = vmul.f32 %v1840_v40, %v1434_v53  ;;  %v1471_v40 = vmul.f32 %v1849_v57, %v1439_v12  ;;  %v2681_v53 = vunpack.c.h.bf16 %v2327_v39  ;;  %v1311_v39 = vadd.f32 %v2498_v16, %v1310_v46  ;;  %v1917_v57 = vld [vmem:[%s2059_s18 + $0x70] sm:$0xff]  }
 0x24d   : > { %v1280_v41 = vpop.f32.mrf.mxu1  ;;  %v1864_v45 = vunpack.c.l.bf16 %v1916_v48  ;;  %v1865_v33 = vunpack.c.h.bf16 %v1916_v48 }
 0x24e   : > { %v1281_v19 = vadd.f32 %v2498_v16, %v1280_v41  ;;  %v1497_v0 = vadd.f32 %v1496_v32, %v1466_v2  ;;  %v1346_v9 = vsub.f32 %v1301_v47, %v2681_v53  ;;  %v1350_v46 = vsub.f32 %v1311_v39, %v2685_v1 }
 0x250   : > { %v1338_v24 = vsub.f32 %v1281_v19, %v1777_v34  ;;  %v1296_v34 = vadd.f32 %v2498_v16, %v2538_v49  ;;  %v1915_v19 = vld [vmem:[%s2059_s18 + $0x60] sm:$0xff]   ;;  %v1443_v2 = vmul.f32 %v1346_v9, %v1346_v9  ;;  %v1447_v8 = vmul.f32 %v1350_v46, %v1350_v46 }
 0x251   : > { %v1860_v13 = vunpack.c.l.bf16 %v1915_v19  ;;  %v1861_v4 = vunpack.c.h.bf16 %v1915_v19 }
 0x252   : > { %v1435_v36 = vmul.f32 %v1338_v24, %v1338_v24  ;;  %v1344_v49 = vsub.f32 %v1296_v34, %v1789_v7  ;;  %v1348_v24 = vsub.f32 %v1306_v6, %v2683_v30  ;;  %v1475_v27 = vmul.f32 %v1857_v5, %v1443_v2 }
 0x253   : > { %v1479_v47 = vmul.f32 %v1865_v33, %v1447_v8 }
 0x254   : > { %v1467_v44 = vmul.f32 %v1841_v28, %v1435_v36  ;;  %v1441_v7 = vmul.f32 %v1344_v49, %v1344_v49  ;;  %v1445_v34 = vmul.f32 %v1348_v24, %v1348_v24 }
 0x256   : > { %v1498_v54 = vadd.f32 %v1497_v0, %v1467_v44  ;;  %v1473_v17 = vmul.f32 %v1853_v51, %v1441_v7  ;;  %v1476_v44 = vmul.f32 %v1860_v13, %v1444_v38  ;;  %v1477_v26 = vmul.f32 %v1861_v4, %v1445_v34 }
 0x257   : > { %v1869_v7 = vunpack.c.h.bf16 %v1917_v57 }
 0x258   : > { %v1499_v14 = vadd.f32 %v1498_v54, %v1468_v62 }
 0x25a   : > { %v1500_v63 = vadd.f32 %v1499_v14, %v1469_v31  ;;  %v1313_v58 = vpop.f32.mrf.mxu3  ;;  %v1478_v31 = vmul.f32 %v1864_v45, %v1446_v15  ;;  %v1868_v14 = vunpack.c.l.bf16 %v1917_v57 }
 0x25b   : > { %v1314_v60 = vadd.f32 %v2498_v16, %v1313_v58  ;;  %v2687_v58 = vunpack.c.l.bf16 %v2466_v20 }
 0x25c   : > { %v1501_v41 = vadd.f32 %v1500_v63, %v1470_v42 }
 0x25d   : > { %v1351_v54 = vsub.f32 %v1314_v60, %v1804_v43 }
 0x25e   : > { %v1502_v21 = vadd.f32 %v1501_v41, %v1471_v40  ;;  %v1918_v40 = vld [vmem:[%s2059_s18 + $0x78] sm:$0xff]  }
 0x25f   : > { %v1448_v61 = vmul.f32 %v1351_v54, %v1351_v54  ;;  %v1872_v6 = vunpack.c.l.bf16 %v1918_v40  ;;  %v1873_v3 = vunpack.c.h.bf16 %v1918_v40 }
 0x260   : > { %v1503_v28 = vadd.f32 %v1502_v21, %v1472_v25 }
 0x261   : > { %v1480_v51 = vmul.f32 %v1868_v14, %v1448_v61 }
 0x262   : > { %v1504_v32 = vadd.f32 %v1503_v28, %v1473_v17  ;;  %v1315_v36 = vpop.f32.mrf.mxu3 }
 0x263   : > { %v1316_v59 = vadd.f32 %v2498_v16, %v1315_v36 }
 0x264   : > { %v1505_v0 = vadd.f32 %v1504_v32, %v1474_v50  ;;  %v1355_v50 = vld [vmem:[%s2672_s8] sm:$0x1] }
 0x265   : > { %v1352_v11 = vsub.f32 %v1316_v59, %v2686_v35 }
 0x266   : > { %v1506_v62 = vadd.f32 %v1505_v0, %v1475_v27 }
 0x267   : > { %v1449_v53 = vmul.f32 %v1352_v11, %v1352_v11 }
 0x268   : > { %v1507_v12 = vadd.f32 %v1506_v62, %v1476_v44 }
 0x269   : > { %v1481_v52 = vmul.f32 %v1869_v7, %v1449_v53 }
 0x26a   : > { %v1508_v49 = vadd.f32 %v1507_v12, %v1477_v26 }
 0x26b   : > { %v1318_v23 = vpop.f32.mrf.mxu3 }
 0x26c   : > { %v1509_v42 = vadd.f32 %v1508_v49, %v1478_v31  ;;  %v1319_v10 = vadd.f32 %v2498_v16, %v1318_v23 }
 0x26e   : > { %v1510_v63 = vadd.f32 %v1509_v42, %v1479_v47  ;;  %v1353_v43 = vsub.f32 %v1319_v10, %v2687_v58 }
 0x270   : > { %v1511_v9 = vadd.f32 %v1510_v63, %v1480_v51  ;;  %v1450_v41 = vmul.f32 %v1353_v43, %v1353_v43 }
 0x272   : > { %v1512_v55 = vadd.f32 %v1511_v9, %v1481_v52  ;;  %v1482_v22 = vmul.f32 %v1872_v6, %v1450_v41 }
 0x273   : > { %v1320_v25 = vpop.f32.mrf.mxu3 }
 0x274   : > { %v1321_v29 = vadd.f32 %v2498_v16, %v1320_v25  ;;  %v1513_v5 = vadd.f32 %v1512_v55, %v1482_v22 }
 0x276   : > { %v1354_v19 = vsub.f32 %v1321_v29, %v2688_v37 }
 0x278   : > { %v1451_v21 = vmul.f32 %v1354_v19, %v1354_v19 }
 0x27a   : > { %v1483_v39 = vmul.f32 %v1873_v3, %v1451_v21 }
 0x27c   : > { %v1514_v17 = vadd.f32 %v1513_v5, %v1483_v39 }
 0x27e   : > { %v1515_v2 = vrot.slane %v1514_v17, 4 }
 0x280   : > { %v1516_v30 = vadd.f32 %v1515_v2, %v1514_v17 }
 0x282   : > { %v1517_v24 = vrot.slane %v1516_v30, 2 }
 0x284   : > { %v1518_v28 = vadd.f32 %v1517_v24, %v1516_v30 }
 0x286   : > { %v1519_v13 = vrot.slane %v1518_v28, 1 }
 0x288   : > { %v1520_v16 = vadd.f32 %v1519_v13, %v1518_v28 }
 0x28a   : > { %v1521_v38 = vadd.f32 %v1520_v16, %v1355_v50 }
 0x28c   : > { %1522 = vst [vmem:[%s2672_s8] sm:$0x1] %v1521_v38 }
 0x28d PF: > { %s18_s27 = sadd.s32 1, %s1988_s27  }
 0x28e   : > { %p15_p5 = scmp.ge.s32.totalorder %s18_s27, 4  }
 0x290   :  { %17 = sbr.rel (!%p15_p5) target bundleno = 1 (0x1), region = 91 }

</bundles_post_ra>
